<compile_context>
chip_gen: v5e
topology: v5e:2x2
jax: 0.10.0
libtpu: 0.0.40
codegen_flags: <defaults>
</compile_context>

<pallas_src>
import jax
import jax.numpy as jnp
from jax.experimental import pallas as pl
from jax.experimental.pallas import tpu as pltpu


def seq2seq_kernel(len_ref, x_ref,
                   wih_e_ref, whh_e_ref, be_ref,
                   whh_d_ref, bd_ref,
                   wfuse_ref, bfuse_ref,
                   wfc_ref, bfc_ref,
                   out_ref,
                   xproj_ref, hstash_ref):
    T_enc, B, I = x_ref.shape
    H = whh_e_ref.shape[0]
    T_dec, _, O = out_ref.shape

    lengths = len_ref[...]                    # (B, 1) int32
    whh_e = whh_e_ref[...]                    # (H, 4H)
    whh_d = whh_d_ref[...]                    # (H, 4H)
    bd = bd_ref[...]                          # (1, 4H)
    w_fused = wfuse_ref[...]                  # (H, 4H) = whh_d + wfc @ wih_d
    b_fused = bfuse_ref[...]                  # (1, 4H) = bd    + bfc @ wih_d
    wfc = wfc_ref[...]                        # (H, O)
    bfc = bfc_ref[...]                        # (1, O)

    # ---- Encoder input projection hoisted out of the recurrence (one big MXU matmul) ----
    x_flat = x_ref[...].reshape(T_enc * B, I)             # last dim preserved -> cheap reshape
    xproj_ref[...] = (
        jnp.dot(x_flat, wih_e_ref[...], preferred_element_type=jnp.float32)
        + be_ref[...]
    ).reshape(T_enc, B, 4 * H)

    def gates_to_hc(gates, c):
        # One full-tile sigmoid pass (B, 4H); tanh only on the H-wide g slice.
        sig = jax.nn.sigmoid(gates)
        ig = sig[:, 0 * H:1 * H]
        fg = sig[:, 1 * H:2 * H]
        og = sig[:, 3 * H:4 * H]
        gg = jnp.tanh(gates[:, 2 * H:3 * H])
        c_new = fg * c + ig * gg
        h_new = og * jnp.tanh(c_new)
        return h_new, c_new

    # ---- Encoder: LSTM over padded sequence, freeze state past each example's length ----
    def enc_body(t, carry):
        h, c = carry
        gates = xproj_ref[t] + jnp.dot(h, whh_e, preferred_element_type=jnp.float32)
        h_new, c_new = gates_to_hc(gates, c)
        valid = t < lengths                   # (B, 1) bool, broadcasts over H
        return (jnp.where(valid, h_new, h), jnp.where(valid, c_new, c))

    h = jnp.zeros((B, H), jnp.float32)
    c = jnp.zeros((B, H), jnp.float32)
    h, c = jax.lax.fori_loop(0, T_enc, enc_body, (h, c), unroll=True)

    # ---- Decoder: LSTMCell with algebraically-fused output feedback ----
    # Step 0: dec_in = 0  ->  gates = h @ whh_d + bd   (must stay unfused).
    gates0 = jnp.dot(h, whh_d, preferred_element_type=jnp.float32) + bd
    h, c = gates_to_hc(gates0, c)
    hstash_ref[0] = h

    # Steps t>=1: dec_in = h @ wfc + bfc  ->  gates = h @ w_fused + b_fused.
    def dec_body(t, carry):
        h, c = carry
        gates = jnp.dot(h, w_fused, preferred_element_type=jnp.float32) + b_fused
        h, c = gates_to_hc(gates, c)
        hstash_ref[t] = h
        return (h, c)

    jax.lax.fori_loop(1, T_dec, dec_body, (h, c), unroll=True)

    # ---- Batched output projection + single dense writeback ----
    h_all = hstash_ref[...].reshape(T_dec * B, H)
    outs = jnp.dot(h_all, wfc, preferred_element_type=jnp.float32) + bfc
    out_ref[...] = outs.reshape(T_dec, B, O).astype(out_ref.dtype)


def _full_spec(shape):
    nd = len(shape)
    return pl.BlockSpec(shape, lambda i, _nd=nd: (0,) * _nd)


def seq2seq_forward(x_btf, lengths, params):
    """x_btf: (B, T, I) float32, lengths: (B,) int32 (concrete). Returns (B, seq_len, O)."""
    B, T_enc, _ = x_btf.shape
    H = params["whh_e"].shape[0]
    O = params["wfc"].shape[1]
    # Matches lengths.max().item() in PyTorch (host sync / retrace per distinct max length).
    seq_len = int(jnp.max(lengths))

    x_tm = jnp.transpose(x_btf, (1, 0, 2)).astype(jnp.float32)   # (T, B, I)
    len2d = lengths.reshape(B, 1).astype(jnp.int32)

    # Decoder feedback fusion precomputed once outside the kernel.
    w_fused = params["whh_d"] + jnp.dot(params["wfc"], params["wih_d"])
    b_fused = params["bd"] + jnp.dot(params["bfc"], params["wih_d"])

    ins = (len2d, x_tm,
           params["wih_e"], params["whh_e"], params["be"],
           params["whh_d"], params["bd"],
           w_fused, b_fused,
           params["wfc"], params["bfc"])

    out_tm = pl.pallas_call(
        seq2seq_kernel,
        out_shape=jax.ShapeDtypeStruct((seq_len, B, O), jnp.float32),
        grid=(1,),
        in_specs=[_full_spec(a.shape) for a in ins],
        out_specs=_full_spec((seq_len, B, O)),
        scratch_shapes=[
            pltpu.VMEM((T_enc, B, 4 * H), jnp.float32),   # hoisted encoder input projection
            pltpu.VMEM((seq_len, B, H), jnp.float32),     # stashed decoder hidden states
        ],
        compiler_params=pltpu.CompilerParams(
            dimension_semantics=("arbitrary",),
        ),
    )(*ins)

    return jnp.transpose(out_tm, (1, 0, 2))    # (B, seq_len, O)


# ---------------------------------------------------------------------------
# Pure-JAX reference (same math as the PyTorch module, unfused) for verification.
# ---------------------------------------------------------------------------
def seq2seq_reference(x_btf, lengths, params):
    B, T_enc, _ = x_btf.shape
    H = params["whh_e"].shape[0]
    seq_len = int(jnp.max(lengths))

    def lstm_step(x_t, h, c, wih, whh, b):
        gates = x_t @ wih + h @ whh + b
        ig = jax.nn.sigmoid(gates[:, 0 * H:1 * H])
        fg = jax.nn.sigmoid(gates[:, 1 * H:2 * H])
        gg = jnp.tanh(gates[:, 2 * H:3 * H])
        og = jax.nn.sigmoid(gates[:, 3 * H:4 * H])
        c_new = fg * c + ig * gg
        h_new = og * jnp.tanh(c_new)
        return h_new, c_new

    h = jnp.zeros((B, H), jnp.float32)
    c = jnp.zeros((B, H), jnp.float32)
    for t in range(T_enc):
        h_new, c_new = lstm_step(x_btf[:, t, :], h, c,
                                 params["wih_e"], params["whh_e"], params["be"])
        valid = (t < lengths).reshape(B, 1)
        h = jnp.where(valid, h_new, h)
        c = jnp.where(valid, c_new, c)

    dec_in = jnp.zeros((B, params["wfc"].shape[1]), jnp.float32)
    outs = []
    for _ in range(seq_len):
        h, c = lstm_step(dec_in, h, c, params["wih_d"], params["whh_d"], params["bd"])
        out = h @ params["wfc"] + params["bfc"]
        outs.append(out)
        dec_in = out
    return jnp.stack(outs, axis=1)


def init_params(key, input_size, output_size, hidden_size):
    k = 1.0 / jnp.sqrt(hidden_size)
    keys = jax.random.split(key, 10)
    u = lambda kk, shape: jax.random.uniform(kk, shape, jnp.float32, -k, k)
    return {
        # encoder nn.LSTM (single layer), weights pre-transposed: (in, 4H) / (H, 4H)
        "wih_e": u(keys[0], (input_size, 4 * hidden_size)),
        "whh_e": u(keys[1], (hidden_size, 4 * hidden_size)),
        "be":    u(keys[2], (1, 4 * hidden_size)) + u(keys[3], (1, 4 * hidden_size)),  # b_ih + b_hh
        # decoder nn.LSTMCell
        "wih_d": u(keys[4], (output_size, 4 * hidden_size)),
        "whh_d": u(keys[5], (hidden_size, 4 * hidden_size)),
        "bd":    u(keys[6], (1, 4 * hidden_size)) + u(keys[7], (1, 4 * hidden_size)),
        # decoder fc: nn.Linear(hidden, output)
        "wfc":   u(keys[8], (hidden_size, output_size)),
        "bfc":   u(keys[9], (1, output_size)),
    }


if __name__ == "__main__":
    # Small shapes consistent with the module: input_size == output_size, one LSTM layer.
    B, T, I, H = 8, 8, 16, 32
    O = I

    key = jax.random.PRNGKey(0)
    kx, kp = jax.random.split(key)
    x = jax.random.normal(kx, (B, T, I), jnp.float32)
    lengths = jnp.array([8, 6, 8, 5, 7, 8, 4, 8], dtype=jnp.int32)
    params = init_params(kp, I, O, H)

    out = seq2seq_forward(x, lengths, params)
    out = jax.block_until_ready(out)

    ref = seq2seq_reference(x, lengths, params)
    assert out.shape == (B, int(jnp.max(lengths)), O), out.shape
    # Slightly looser tolerance than bit-order-identical math: the decoder feedback matmul is
    # algebraically fused (reassociated), which perturbs f32 rounding at the ~1e-6 level.
    assert jnp.allclose(out, ref, atol=1e-4, rtol=1e-4), float(jnp.max(jnp.abs(out - ref)))

    print("KERNEL_OK")
</pallas_src>

<mosaic_0001>
module attributes {stable_mosaic.version = 11 : i64} {
  func.func @seq2seq_kernel(%arg0: i32, %arg1: memref<8x1xi32, #tpu.memory_space<vmem>>, %arg2: memref<8x8x16xf32, #tpu.memory_space<vmem>>, %arg3: memref<16x128xf32, #tpu.memory_space<vmem>>, %arg4: memref<32x128xf32, #tpu.memory_space<vmem>>, %arg5: memref<1x128xf32, #tpu.memory_space<vmem>>, %arg6: memref<32x128xf32, #tpu.memory_space<vmem>>, %arg7: memref<1x128xf32, #tpu.memory_space<vmem>>, %arg8: memref<32x128xf32, #tpu.memory_space<vmem>>, %arg9: memref<1x128xf32, #tpu.memory_space<vmem>>, %arg10: memref<32x16xf32, #tpu.memory_space<vmem>>, %arg11: memref<1x16xf32, #tpu.memory_space<vmem>>, %arg12: memref<8x8x16xf32, #tpu.memory_space<vmem>>, %arg13: memref<8x8x128xf32, #tpu.memory_space<vmem>>, %arg14: memref<8x8x32xf32, #tpu.memory_space<vmem>>) attributes {dimension_semantics = [#tpu.dimension_semantics<arbitrary>], iteration_bounds = array<i64: 1>, scalar_prefetch = 0 : i64, scratch_operands = 2 : i64, tpu.core_type = #tpu.core_type<tc>, window_params = [{pipeline_mode = #tpu.pipeline_mode<synchronous>, transform_indices = @transform_0, window_bounds = array<i64: 8, 1>}, {pipeline_mode = #tpu.pipeline_mode<synchronous>, transform_indices = @transform_1, window_bounds = array<i64: 8, 8, 16>}, {pipeline_mode = #tpu.pipeline_mode<synchronous>, transform_indices = @transform_2, window_bounds = array<i64: 16, 128>}, {pipeline_mode = #tpu.pipeline_mode<synchronous>, transform_indices = @transform_3, window_bounds = array<i64: 32, 128>}, {pipeline_mode = #tpu.pipeline_mode<synchronous>, transform_indices = @transform_4, window_bounds = array<i64: 1, 128>}, {pipeline_mode = #tpu.pipeline_mode<synchronous>, transform_indices = @transform_5, window_bounds = array<i64: 32, 128>}, {pipeline_mode = #tpu.pipeline_mode<synchronous>, transform_indices = @transform_6, window_bounds = array<i64: 1, 128>}, {pipeline_mode = #tpu.pipeline_mode<synchronous>, transform_indices = @transform_7, window_bounds = array<i64: 32, 128>}, {pipeline_mode = #tpu.pipeline_mode<synchronous>, transform_indices = @transform_8, window_bounds = array<i64: 1, 128>}, {pipeline_mode = #tpu.pipeline_mode<synchronous>, transform_indices = @transform_9, window_bounds = array<i64: 32, 16>}, {pipeline_mode = #tpu.pipeline_mode<synchronous>, transform_indices = @transform_10, window_bounds = array<i64: 1, 16>}, {pipeline_mode = #tpu.pipeline_mode<synchronous>, transform_indices = @transform_11, window_bounds = array<i64: 8, 8, 16>}]} {
    %c0 = arith.constant 0 : index
    %c0_0 = arith.constant 0 : index
    %0 = vector.load %arg1[%c0, %c0_0] : memref<8x1xi32, #tpu.memory_space<vmem>>, vector<8x1xi32>
    %c0_1 = arith.constant 0 : index
    %c0_2 = arith.constant 0 : index
    %1 = vector.load %arg4[%c0_1, %c0_2] : memref<32x128xf32, #tpu.memory_space<vmem>>, vector<32x128xf32>
    %c0_3 = arith.constant 0 : index
    %c0_4 = arith.constant 0 : index
    %2 = vector.load %arg6[%c0_3, %c0_4] : memref<32x128xf32, #tpu.memory_space<vmem>>, vector<32x128xf32>
    %c0_5 = arith.constant 0 : index
    %c0_6 = arith.constant 0 : index
    %3 = vector.load %arg7[%c0_5, %c0_6] : memref<1x128xf32, #tpu.memory_space<vmem>>, vector<1x128xf32>
    %c0_7 = arith.constant 0 : index
    %c0_8 = arith.constant 0 : index
    %4 = vector.load %arg8[%c0_7, %c0_8] : memref<32x128xf32, #tpu.memory_space<vmem>>, vector<32x128xf32>
    %c0_9 = arith.constant 0 : index
    %c0_10 = arith.constant 0 : index
    %5 = vector.load %arg9[%c0_9, %c0_10] : memref<1x128xf32, #tpu.memory_space<vmem>>, vector<1x128xf32>
    %c0_11 = arith.constant 0 : index
    %c0_12 = arith.constant 0 : index
    %6 = vector.load %arg10[%c0_11, %c0_12] : memref<32x16xf32, #tpu.memory_space<vmem>>, vector<32x16xf32>
    %c0_13 = arith.constant 0 : index
    %c0_14 = arith.constant 0 : index
    %7 = vector.load %arg11[%c0_13, %c0_14] : memref<1x16xf32, #tpu.memory_space<vmem>>, vector<1x16xf32>
    %c0_15 = arith.constant 0 : index
    %c0_16 = arith.constant 0 : index
    %c0_17 = arith.constant 0 : index
    %8 = vector.load %arg2[%c0_15, %c0_16, %c0_17] : memref<8x8x16xf32, #tpu.memory_space<vmem>>, vector<8x8x16xf32>
    %9 = vector.shape_cast %8 : vector<8x8x16xf32> to vector<64x16xf32>
    %c0_18 = arith.constant 0 : index
    %c0_19 = arith.constant 0 : index
    %10 = vector.load %arg3[%c0_18, %c0_19] : memref<16x128xf32, #tpu.memory_space<vmem>>, vector<16x128xf32>
    %cst = arith.constant dense<0.000000e+00> : vector<64x128xf32>
    %11 = tpu.matmul %9, %10, %cst {dimension_numbers = #tpu.dot_dimension_numbers<[1], [0], [0], [1], [0, 0, 1, 1], [], []>} : vector<64x16xf32>, vector<16x128xf32>, vector<64x128xf32> -> vector<64x128xf32>
    %c0_20 = arith.constant 0 : index
    %c0_21 = arith.constant 0 : index
    %12 = vector.load %arg5[%c0_20, %c0_21] : memref<1x128xf32, #tpu.memory_space<vmem>>, vector<1x128xf32>
    %13 = vector.broadcast %12 : vector<1x128xf32> to vector<64x128xf32>
    %14 = arith.addf %11, %13 : vector<64x128xf32>
    %15 = vector.shape_cast %14 : vector<64x128xf32> to vector<8x8x128xf32>
    %c0_22 = arith.constant 0 : index
    %c0_23 = arith.constant 0 : index
    %c0_24 = arith.constant 0 : index
    %16 = vector.load %arg13[%c0_22, %c0_23, %c0_24] : memref<8x8x128xf32, #tpu.memory_space<vmem>>, vector<8x8x128xf32>
    tpu.vector_store %arg13[%c0_22, %c0_23, %c0_24], %15 {strides = array<i32>} : memref<8x8x128xf32, #tpu.memory_space<vmem>>, vector<8x8x128xf32>,
    %cst_25 = arith.constant 0.000000e+00 : f32
    %17 = vector.broadcast %cst_25 : f32 to vector<8x32xf32>
    %cst_26 = arith.constant 0.000000e+00 : f32
    %18 = vector.broadcast %cst_26 : f32 to vector<8x32xf32>
    %c0_i32 = arith.constant 0 : i32
    %19 = arith.index_cast %c0_i32 : i32 to index
    %c0_27 = arith.constant 0 : index
    %c0_28 = arith.constant 0 : index
    %20 = vector.load %arg13[%19, %c0_27, %c0_28] : memref<8x8x128xf32, #tpu.memory_space<vmem>>, vector<1x8x128xf32>
    %21 = vector.shape_cast %20 : vector<1x8x128xf32> to vector<8x128xf32>
    %cst_29 = arith.constant dense<0.000000e+00> : vector<8x128xf32>
    %22 = tpu.matmul %17, %1, %cst_29 {dimension_numbers = #tpu.dot_dimension_numbers<[1], [0], [0], [1], [0, 0, 1, 1], [], []>} : vector<8x32xf32>, vector<32x128xf32>, vector<8x128xf32> -> vector<8x128xf32>
    %23 = arith.addf %21, %22 : vector<8x128xf32>
    %24 = arith.negf %23 : vector<8x128xf32>
    %25 = math.exp %24 : vector<8x128xf32>
    %cst_30 = arith.constant 1.000000e+00 : f32
    %26 = vector.broadcast %cst_30 : f32 to vector<8x128xf32>
    %27 = arith.addf %26, %25 : vector<8x128xf32>
    %28 = arith.divf %26, %27 : vector<8x128xf32>
    %29 = vector.extract_strided_slice %28 {offsets = [0, 0], sizes = [8, 32], strides = [1, 1]} : vector<8x128xf32> to vector<8x32xf32>
    %30 = vector.extract_strided_slice %28 {offsets = [0, 32], sizes = [8, 32], strides = [1, 1]} : vector<8x128xf32> to vector<8x32xf32>
    %31 = vector.extract_strided_slice %28 {offsets = [0, 96], sizes = [8, 32], strides = [1, 1]} : vector<8x128xf32> to vector<8x32xf32>
    %32 = vector.extract_strided_slice %23 {offsets = [0, 64], sizes = [8, 32], strides = [1, 1]} : vector<8x128xf32> to vector<8x32xf32>
    %33 = math.tanh %32 : vector<8x32xf32>
    %34 = arith.mulf %30, %18 : vector<8x32xf32>
    %35 = arith.mulf %29, %33 : vector<8x32xf32>
    %36 = arith.addf %34, %35 : vector<8x32xf32>
    %37 = math.tanh %36 : vector<8x32xf32>
    %38 = arith.mulf %31, %37 : vector<8x32xf32>
    %39 = vector.broadcast %c0_i32 : i32 to vector<8x1xi32>
    %40 = arith.cmpi slt, %39, %0 : vector<8x1xi32>
    %41 = vector.shape_cast %40 : vector<8x1xi1> to vector<8x1xi1>
    %42 = vector.broadcast %41 : vector<8x1xi1> to vector<8x32xi1>
    %43 = arith.select %42, %38, %17 : vector<8x32xi1>, vector<8x32xf32>
    %44 = vector.shape_cast %40 : vector<8x1xi1> to vector<8x1xi1>
    %45 = vector.broadcast %44 : vector<8x1xi1> to vector<8x32xi1>
    %46 = arith.select %45, %36, %18 : vector<8x32xi1>, vector<8x32xf32>
    %c1_i32 = arith.constant 1 : i32
    %47 = arith.index_cast %c1_i32 : i32 to index
    %c0_31 = arith.constant 0 : index
    %c0_32 = arith.constant 0 : index
    %48 = vector.load %arg13[%47, %c0_31, %c0_32] : memref<8x8x128xf32, #tpu.memory_space<vmem>>, vector<1x8x128xf32>
    %49 = vector.shape_cast %48 : vector<1x8x128xf32> to vector<8x128xf32>
    %cst_33 = arith.constant dense<0.000000e+00> : vector<8x128xf32>
    %50 = tpu.matmul %43, %1, %cst_33 {dimension_numbers = #tpu.dot_dimension_numbers<[1], [0], [0], [1], [0, 0, 1, 1], [], []>} : vector<8x32xf32>, vector<32x128xf32>, vector<8x128xf32> -> vector<8x128xf32>
    %51 = arith.addf %49, %50 : vector<8x128xf32>
    %52 = arith.negf %51 : vector<8x128xf32>
    %53 = math.exp %52 : vector<8x128xf32>
    %cst_34 = arith.constant 1.000000e+00 : f32
    %54 = vector.broadcast %cst_34 : f32 to vector<8x128xf32>
    %55 = arith.addf %54, %53 : vector<8x128xf32>
    %56 = arith.divf %54, %55 : vector<8x128xf32>
    %57 = vector.extract_strided_slice %56 {offsets = [0, 0], sizes = [8, 32], strides = [1, 1]} : vector<8x128xf32> to vector<8x32xf32>
    %58 = vector.extract_strided_slice %56 {offsets = [0, 32], sizes = [8, 32], strides = [1, 1]} : vector<8x128xf32> to vector<8x32xf32>
    %59 = vector.extract_strided_slice %56 {offsets = [0, 96], sizes = [8, 32], strides = [1, 1]} : vector<8x128xf32> to vector<8x32xf32>
    %60 = vector.extract_strided_slice %51 {offsets = [0, 64], sizes = [8, 32], strides = [1, 1]} : vector<8x128xf32> to vector<8x32xf32>
    %61 = math.tanh %60 : vector<8x32xf32>
    %62 = arith.mulf %58, %46 : vector<8x32xf32>
    %63 = arith.mulf %57, %61 : vector<8x32xf32>
    %64 = arith.addf %62, %63 : vector<8x32xf32>
    %65 = math.tanh %64 : vector<8x32xf32>
    %66 = arith.mulf %59, %65 : vector<8x32xf32>
    %67 = vector.broadcast %c1_i32 : i32 to vector<8x1xi32>
    %68 = arith.cmpi slt, %67, %0 : vector<8x1xi32>
    %69 = vector.shape_cast %68 : vector<8x1xi1> to vector<8x1xi1>
    %70 = vector.broadcast %69 : vector<8x1xi1> to vector<8x32xi1>
    %71 = arith.select %70, %66, %43 : vector<8x32xi1>, vector<8x32xf32>
    %72 = vector.shape_cast %68 : vector<8x1xi1> to vector<8x1xi1>
    %73 = vector.broadcast %72 : vector<8x1xi1> to vector<8x32xi1>
    %74 = arith.select %73, %64, %46 : vector<8x32xi1>, vector<8x32xf32>
    %c2_i32 = arith.constant 2 : i32
    %75 = arith.index_cast %c2_i32 : i32 to index
    %c0_35 = arith.constant 0 : index
    %c0_36 = arith.constant 0 : index
    %76 = vector.load %arg13[%75, %c0_35, %c0_36] : memref<8x8x128xf32, #tpu.memory_space<vmem>>, vector<1x8x128xf32>
    %77 = vector.shape_cast %76 : vector<1x8x128xf32> to vector<8x128xf32>
    %cst_37 = arith.constant dense<0.000000e+00> : vector<8x128xf32>
    %78 = tpu.matmul %71, %1, %cst_37 {dimension_numbers = #tpu.dot_dimension_numbers<[1], [0], [0], [1], [0, 0, 1, 1], [], []>} : vector<8x32xf32>, vector<32x128xf32>, vector<8x128xf32> -> vector<8x128xf32>
    %79 = arith.addf %77, %78 : vector<8x128xf32>
    %80 = arith.negf %79 : vector<8x128xf32>
    %81 = math.exp %80 : vector<8x128xf32>
    %cst_38 = arith.constant 1.000000e+00 : f32
    %82 = vector.broadcast %cst_38 : f32 to vector<8x128xf32>
    %83 = arith.addf %82, %81 : vector<8x128xf32>
    %84 = arith.divf %82, %83 : vector<8x128xf32>
    %85 = vector.extract_strided_slice %84 {offsets = [0, 0], sizes = [8, 32], strides = [1, 1]} : vector<8x128xf32> to vector<8x32xf32>
    %86 = vector.extract_strided_slice %84 {offsets = [0, 32], sizes = [8, 32], strides = [1, 1]} : vector<8x128xf32> to vector<8x32xf32>
    %87 = vector.extract_strided_slice %84 {offsets = [0, 96], sizes = [8, 32], strides = [1, 1]} : vector<8x128xf32> to vector<8x32xf32>
    %88 = vector.extract_strided_slice %79 {offsets = [0, 64], sizes = [8, 32], strides = [1, 1]} : vector<8x128xf32> to vector<8x32xf32>
    %89 = math.tanh %88 : vector<8x32xf32>
    %90 = arith.mulf %86, %74 : vector<8x32xf32>
    %91 = arith.mulf %85, %89 : vector<8x32xf32>
    %92 = arith.addf %90, %91 : vector<8x32xf32>
    %93 = math.tanh %92 : vector<8x32xf32>
    %94 = arith.mulf %87, %93 : vector<8x32xf32>
    %95 = vector.broadcast %c2_i32 : i32 to vector<8x1xi32>
    %96 = arith.cmpi slt, %95, %0 : vector<8x1xi32>
    %97 = vector.shape_cast %96 : vector<8x1xi1> to vector<8x1xi1>
    %98 = vector.broadcast %97 : vector<8x1xi1> to vector<8x32xi1>
    %99 = arith.select %98, %94, %71 : vector<8x32xi1>, vector<8x32xf32>
    %100 = vector.shape_cast %96 : vector<8x1xi1> to vector<8x1xi1>
    %101 = vector.broadcast %100 : vector<8x1xi1> to vector<8x32xi1>
    %102 = arith.select %101, %92, %74 : vector<8x32xi1>, vector<8x32xf32>
    %c3_i32 = arith.constant 3 : i32
    %103 = arith.index_cast %c3_i32 : i32 to index
    %c0_39 = arith.constant 0 : index
    %c0_40 = arith.constant 0 : index
    %104 = vector.load %arg13[%103, %c0_39, %c0_40] : memref<8x8x128xf32, #tpu.memory_space<vmem>>, vector<1x8x128xf32>
    %105 = vector.shape_cast %104 : vector<1x8x128xf32> to vector<8x128xf32>
    %cst_41 = arith.constant dense<0.000000e+00> : vector<8x128xf32>
    %106 = tpu.matmul %99, %1, %cst_41 {dimension_numbers = #tpu.dot_dimension_numbers<[1], [0], [0], [1], [0, 0, 1, 1], [], []>} : vector<8x32xf32>, vector<32x128xf32>, vector<8x128xf32> -> vector<8x128xf32>
    %107 = arith.addf %105, %106 : vector<8x128xf32>
    %108 = arith.negf %107 : vector<8x128xf32>
    %109 = math.exp %108 : vector<8x128xf32>
    %cst_42 = arith.constant 1.000000e+00 : f32
    %110 = vector.broadcast %cst_42 : f32 to vector<8x128xf32>
    %111 = arith.addf %110, %109 : vector<8x128xf32>
    %112 = arith.divf %110, %111 : vector<8x128xf32>
    %113 = vector.extract_strided_slice %112 {offsets = [0, 0], sizes = [8, 32], strides = [1, 1]} : vector<8x128xf32> to vector<8x32xf32>
    %114 = vector.extract_strided_slice %112 {offsets = [0, 32], sizes = [8, 32], strides = [1, 1]} : vector<8x128xf32> to vector<8x32xf32>
    %115 = vector.extract_strided_slice %112 {offsets = [0, 96], sizes = [8, 32], strides = [1, 1]} : vector<8x128xf32> to vector<8x32xf32>
    %116 = vector.extract_strided_slice %107 {offsets = [0, 64], sizes = [8, 32], strides = [1, 1]} : vector<8x128xf32> to vector<8x32xf32>
    %117 = math.tanh %116 : vector<8x32xf32>
    %118 = arith.mulf %114, %102 : vector<8x32xf32>
    %119 = arith.mulf %113, %117 : vector<8x32xf32>
    %120 = arith.addf %118, %119 : vector<8x32xf32>
    %121 = math.tanh %120 : vector<8x32xf32>
    %122 = arith.mulf %115, %121 : vector<8x32xf32>
    %123 = vector.broadcast %c3_i32 : i32 to vector<8x1xi32>
    %124 = arith.cmpi slt, %123, %0 : vector<8x1xi32>
    %125 = vector.shape_cast %124 : vector<8x1xi1> to vector<8x1xi1>
    %126 = vector.broadcast %125 : vector<8x1xi1> to vector<8x32xi1>
    %127 = arith.select %126, %122, %99 : vector<8x32xi1>, vector<8x32xf32>
    %128 = vector.shape_cast %124 : vector<8x1xi1> to vector<8x1xi1>
    %129 = vector.broadcast %128 : vector<8x1xi1> to vector<8x32xi1>
    %130 = arith.select %129, %120, %102 : vector<8x32xi1>, vector<8x32xf32>
    %c4_i32 = arith.constant 4 : i32
    %131 = arith.index_cast %c4_i32 : i32 to index
    %c0_43 = arith.constant 0 : index
    %c0_44 = arith.constant 0 : index
    %132 = vector.load %arg13[%131, %c0_43, %c0_44] : memref<8x8x128xf32, #tpu.memory_space<vmem>>, vector<1x8x128xf32>
    %133 = vector.shape_cast %132 : vector<1x8x128xf32> to vector<8x128xf32>
    %cst_45 = arith.constant dense<0.000000e+00> : vector<8x128xf32>
    %134 = tpu.matmul %127, %1, %cst_45 {dimension_numbers = #tpu.dot_dimension_numbers<[1], [0], [0], [1], [0, 0, 1, 1], [], []>} : vector<8x32xf32>, vector<32x128xf32>, vector<8x128xf32> -> vector<8x128xf32>
    %135 = arith.addf %133, %134 : vector<8x128xf32>
    %136 = arith.negf %135 : vector<8x128xf32>
    %137 = math.exp %136 : vector<8x128xf32>
    %cst_46 = arith.constant 1.000000e+00 : f32
    %138 = vector.broadcast %cst_46 : f32 to vector<8x128xf32>
    %139 = arith.addf %138, %137 : vector<8x128xf32>
    %140 = arith.divf %138, %139 : vector<8x128xf32>
    %141 = vector.extract_strided_slice %140 {offsets = [0, 0], sizes = [8, 32], strides = [1, 1]} : vector<8x128xf32> to vector<8x32xf32>
    %142 = vector.extract_strided_slice %140 {offsets = [0, 32], sizes = [8, 32], strides = [1, 1]} : vector<8x128xf32> to vector<8x32xf32>
    %143 = vector.extract_strided_slice %140 {offsets = [0, 96], sizes = [8, 32], strides = [1, 1]} : vector<8x128xf32> to vector<8x32xf32>
    %144 = vector.extract_strided_slice %135 {offsets = [0, 64], sizes = [8, 32], strides = [1, 1]} : vector<8x128xf32> to vector<8x32xf32>
    %145 = math.tanh %144 : vector<8x32xf32>
    %146 = arith.mulf %142, %130 : vector<8x32xf32>
    %147 = arith.mulf %141, %145 : vector<8x32xf32>
    %148 = arith.addf %146, %147 : vector<8x32xf32>
    %149 = math.tanh %148 : vector<8x32xf32>
    %150 = arith.mulf %143, %149 : vector<8x32xf32>
    %151 = vector.broadcast %c4_i32 : i32 to vector<8x1xi32>
    %152 = arith.cmpi slt, %151, %0 : vector<8x1xi32>
    %153 = vector.shape_cast %152 : vector<8x1xi1> to vector<8x1xi1>
    %154 = vector.broadcast %153 : vector<8x1xi1> to vector<8x32xi1>
    %155 = arith.select %154, %150, %127 : vector<8x32xi1>, vector<8x32xf32>
    %156 = vector.shape_cast %152 : vector<8x1xi1> to vector<8x1xi1>
    %157 = vector.broadcast %156 : vector<8x1xi1> to vector<8x32xi1>
    %158 = arith.select %157, %148, %130 : vector<8x32xi1>, vector<8x32xf32>
    %c5_i32 = arith.constant 5 : i32
    %159 = arith.index_cast %c5_i32 : i32 to index
    %c0_47 = arith.constant 0 : index
    %c0_48 = arith.constant 0 : index
    %160 = vector.load %arg13[%159, %c0_47, %c0_48] : memref<8x8x128xf32, #tpu.memory_space<vmem>>, vector<1x8x128xf32>
    %161 = vector.shape_cast %160 : vector<1x8x128xf32> to vector<8x128xf32>
    %cst_49 = arith.constant dense<0.000000e+00> : vector<8x128xf32>
    %162 = tpu.matmul %155, %1, %cst_49 {dimension_numbers = #tpu.dot_dimension_numbers<[1], [0], [0], [1], [0, 0, 1, 1], [], []>} : vector<8x32xf32>, vector<32x128xf32>, vector<8x128xf32> -> vector<8x128xf32>
    %163 = arith.addf %161, %162 : vector<8x128xf32>
    %164 = arith.negf %163 : vector<8x128xf32>
    %165 = math.exp %164 : vector<8x128xf32>
    %cst_50 = arith.constant 1.000000e+00 : f32
    %166 = vector.broadcast %cst_50 : f32 to vector<8x128xf32>
    %167 = arith.addf %166, %165 : vector<8x128xf32>
    %168 = arith.divf %166, %167 : vector<8x128xf32>
    %169 = vector.extract_strided_slice %168 {offsets = [0, 0], sizes = [8, 32], strides = [1, 1]} : vector<8x128xf32> to vector<8x32xf32>
    %170 = vector.extract_strided_slice %168 {offsets = [0, 32], sizes = [8, 32], strides = [1, 1]} : vector<8x128xf32> to vector<8x32xf32>
    %171 = vector.extract_strided_slice %168 {offsets = [0, 96], sizes = [8, 32], strides = [1, 1]} : vector<8x128xf32> to vector<8x32xf32>
    %172 = vector.extract_strided_slice %163 {offsets = [0, 64], sizes = [8, 32], strides = [1, 1]} : vector<8x128xf32> to vector<8x32xf32>
    %173 = math.tanh %172 : vector<8x32xf32>
    %174 = arith.mulf %170, %158 : vector<8x32xf32>
    %175 = arith.mulf %169, %173 : vector<8x32xf32>
    %176 = arith.addf %174, %175 : vector<8x32xf32>
    %177 = math.tanh %176 : vector<8x32xf32>
    %178 = arith.mulf %171, %177 : vector<8x32xf32>
    %179 = vector.broadcast %c5_i32 : i32 to vector<8x1xi32>
    %180 = arith.cmpi slt, %179, %0 : vector<8x1xi32>
    %181 = vector.shape_cast %180 : vector<8x1xi1> to vector<8x1xi1>
    %182 = vector.broadcast %181 : vector<8x1xi1> to vector<8x32xi1>
    %183 = arith.select %182, %178, %155 : vector<8x32xi1>, vector<8x32xf32>
    %184 = vector.shape_cast %180 : vector<8x1xi1> to vector<8x1xi1>
    %185 = vector.broadcast %184 : vector<8x1xi1> to vector<8x32xi1>
    %186 = arith.select %185, %176, %158 : vector<8x32xi1>, vector<8x32xf32>
    %c6_i32 = arith.constant 6 : i32
    %187 = arith.index_cast %c6_i32 : i32 to index
    %c0_51 = arith.constant 0 : index
    %c0_52 = arith.constant 0 : index
    %188 = vector.load %arg13[%187, %c0_51, %c0_52] : memref<8x8x128xf32, #tpu.memory_space<vmem>>, vector<1x8x128xf32>
    %189 = vector.shape_cast %188 : vector<1x8x128xf32> to vector<8x128xf32>
    %cst_53 = arith.constant dense<0.000000e+00> : vector<8x128xf32>
    %190 = tpu.matmul %183, %1, %cst_53 {dimension_numbers = #tpu.dot_dimension_numbers<[1], [0], [0], [1], [0, 0, 1, 1], [], []>} : vector<8x32xf32>, vector<32x128xf32>, vector<8x128xf32> -> vector<8x128xf32>
    %191 = arith.addf %189, %190 : vector<8x128xf32>
    %192 = arith.negf %191 : vector<8x128xf32>
    %193 = math.exp %192 : vector<8x128xf32>
    %cst_54 = arith.constant 1.000000e+00 : f32
    %194 = vector.broadcast %cst_54 : f32 to vector<8x128xf32>
    %195 = arith.addf %194, %193 : vector<8x128xf32>
    %196 = arith.divf %194, %195 : vector<8x128xf32>
    %197 = vector.extract_strided_slice %196 {offsets = [0, 0], sizes = [8, 32], strides = [1, 1]} : vector<8x128xf32> to vector<8x32xf32>
    %198 = vector.extract_strided_slice %196 {offsets = [0, 32], sizes = [8, 32], strides = [1, 1]} : vector<8x128xf32> to vector<8x32xf32>
    %199 = vector.extract_strided_slice %196 {offsets = [0, 96], sizes = [8, 32], strides = [1, 1]} : vector<8x128xf32> to vector<8x32xf32>
    %200 = vector.extract_strided_slice %191 {offsets = [0, 64], sizes = [8, 32], strides = [1, 1]} : vector<8x128xf32> to vector<8x32xf32>
    %201 = math.tanh %200 : vector<8x32xf32>
    %202 = arith.mulf %198, %186 : vector<8x32xf32>
    %203 = arith.mulf %197, %201 : vector<8x32xf32>
    %204 = arith.addf %202, %203 : vector<8x32xf32>
    %205 = math.tanh %204 : vector<8x32xf32>
    %206 = arith.mulf %199, %205 : vector<8x32xf32>
    %207 = vector.broadcast %c6_i32 : i32 to vector<8x1xi32>
    %208 = arith.cmpi slt, %207, %0 : vector<8x1xi32>
    %209 = vector.shape_cast %208 : vector<8x1xi1> to vector<8x1xi1>
    %210 = vector.broadcast %209 : vector<8x1xi1> to vector<8x32xi1>
    %211 = arith.select %210, %206, %183 : vector<8x32xi1>, vector<8x32xf32>
    %212 = vector.shape_cast %208 : vector<8x1xi1> to vector<8x1xi1>
    %213 = vector.broadcast %212 : vector<8x1xi1> to vector<8x32xi1>
    %214 = arith.select %213, %204, %186 : vector<8x32xi1>, vector<8x32xf32>
    %c7_i32 = arith.constant 7 : i32
    %215 = arith.index_cast %c7_i32 : i32 to index
    %c0_55 = arith.constant 0 : index
    %c0_56 = arith.constant 0 : index
    %216 = vector.load %arg13[%215, %c0_55, %c0_56] : memref<8x8x128xf32, #tpu.memory_space<vmem>>, vector<1x8x128xf32>
    %217 = vector.shape_cast %216 : vector<1x8x128xf32> to vector<8x128xf32>
    %cst_57 = arith.constant dense<0.000000e+00> : vector<8x128xf32>
    %218 = tpu.matmul %211, %1, %cst_57 {dimension_numbers = #tpu.dot_dimension_numbers<[1], [0], [0], [1], [0, 0, 1, 1], [], []>} : vector<8x32xf32>, vector<32x128xf32>, vector<8x128xf32> -> vector<8x128xf32>
    %219 = arith.addf %217, %218 : vector<8x128xf32>
    %220 = arith.negf %219 : vector<8x128xf32>
    %221 = math.exp %220 : vector<8x128xf32>
    %cst_58 = arith.constant 1.000000e+00 : f32
    %222 = vector.broadcast %cst_58 : f32 to vector<8x128xf32>
    %223 = arith.addf %222, %221 : vector<8x128xf32>
    %224 = arith.divf %222, %223 : vector<8x128xf32>
    %225 = vector.extract_strided_slice %224 {offsets = [0, 0], sizes = [8, 32], strides = [1, 1]} : vector<8x128xf32> to vector<8x32xf32>
    %226 = vector.extract_strided_slice %224 {offsets = [0, 32], sizes = [8, 32], strides = [1, 1]} : vector<8x128xf32> to vector<8x32xf32>
    %227 = vector.extract_strided_slice %224 {offsets = [0, 96], sizes = [8, 32], strides = [1, 1]} : vector<8x128xf32> to vector<8x32xf32>
    %228 = vector.extract_strided_slice %219 {offsets = [0, 64], sizes = [8, 32], strides = [1, 1]} : vector<8x128xf32> to vector<8x32xf32>
    %229 = math.tanh %228 : vector<8x32xf32>
    %230 = arith.mulf %226, %214 : vector<8x32xf32>
    %231 = arith.mulf %225, %229 : vector<8x32xf32>
    %232 = arith.addf %230, %231 : vector<8x32xf32>
    %233 = math.tanh %232 : vector<8x32xf32>
    %234 = arith.mulf %227, %233 : vector<8x32xf32>
    %235 = vector.broadcast %c7_i32 : i32 to vector<8x1xi32>
    %236 = arith.cmpi slt, %235, %0 : vector<8x1xi32>
    %237 = vector.shape_cast %236 : vector<8x1xi1> to vector<8x1xi1>
    %238 = vector.broadcast %237 : vector<8x1xi1> to vector<8x32xi1>
    %239 = arith.select %238, %234, %211 : vector<8x32xi1>, vector<8x32xf32>
    %240 = vector.shape_cast %236 : vector<8x1xi1> to vector<8x1xi1>
    %241 = vector.broadcast %240 : vector<8x1xi1> to vector<8x32xi1>
    %242 = arith.select %241, %232, %214 : vector<8x32xi1>, vector<8x32xf32>
    %c8_i32 = arith.constant 8 : i32
    %cst_59 = arith.constant dense<0.000000e+00> : vector<8x128xf32>
    %243 = tpu.matmul %239, %2, %cst_59 {dimension_numbers = #tpu.dot_dimension_numbers<[1], [0], [0], [1], [0, 0, 1, 1], [], []>} : vector<8x32xf32>, vector<32x128xf32>, vector<8x128xf32> -> vector<8x128xf32>
    %244 = vector.broadcast %3 : vector<1x128xf32> to vector<8x128xf32>
    %245 = arith.addf %243, %244 : vector<8x128xf32>
    %246 = arith.negf %245 : vector<8x128xf32>
    %247 = math.exp %246 : vector<8x128xf32>
    %cst_60 = arith.constant 1.000000e+00 : f32
    %248 = vector.broadcast %cst_60 : f32 to vector<8x128xf32>
    %249 = arith.addf %248, %247 : vector<8x128xf32>
    %250 = arith.divf %248, %249 : vector<8x128xf32>
    %251 = vector.extract_strided_slice %250 {offsets = [0, 0], sizes = [8, 32], strides = [1, 1]} : vector<8x128xf32> to vector<8x32xf32>
    %252 = vector.extract_strided_slice %250 {offsets = [0, 32], sizes = [8, 32], strides = [1, 1]} : vector<8x128xf32> to vector<8x32xf32>
    %253 = vector.extract_strided_slice %250 {offsets = [0, 96], sizes = [8, 32], strides = [1, 1]} : vector<8x128xf32> to vector<8x32xf32>
    %254 = vector.extract_strided_slice %245 {offsets = [0, 64], sizes = [8, 32], strides = [1, 1]} : vector<8x128xf32> to vector<8x32xf32>
    %255 = math.tanh %254 : vector<8x32xf32>
    %256 = arith.mulf %252, %242 : vector<8x32xf32>
    %257 = arith.mulf %251, %255 : vector<8x32xf32>
    %258 = arith.addf %256, %257 : vector<8x32xf32>
    %259 = math.tanh %258 : vector<8x32xf32>
    %260 = arith.mulf %253, %259 : vector<8x32xf32>
    %c0_61 = arith.constant 0 : index
    %c0_62 = arith.constant 0 : index
    %c0_63 = arith.constant 0 : index
    %261 = vector.load %arg14[%c0_61, %c0_62, %c0_63] : memref<8x8x32xf32, #tpu.memory_space<vmem>>, vector<1x8x32xf32>
    %262 = vector.shape_cast %261 : vector<1x8x32xf32> to vector<8x32xf32>
    %263 = vector.shape_cast %260 : vector<8x32xf32> to vector<1x8x32xf32>
    tpu.vector_store %arg14[%c0_61, %c0_62, %c0_63], %263 {strides = array<i32>} : memref<8x8x32xf32, #tpu.memory_space<vmem>>, vector<1x8x32xf32>,
    %c1_i32_64 = arith.constant 1 : i32
    %cst_65 = arith.constant dense<0.000000e+00> : vector<8x128xf32>
    %264 = tpu.matmul %260, %4, %cst_65 {dimension_numbers = #tpu.dot_dimension_numbers<[1], [0], [0], [1], [0, 0, 1, 1], [], []>} : vector<8x32xf32>, vector<32x128xf32>, vector<8x128xf32> -> vector<8x128xf32>
    %265 = vector.broadcast %5 : vector<1x128xf32> to vector<8x128xf32>
    %266 = arith.addf %264, %265 : vector<8x128xf32>
    %267 = arith.negf %266 : vector<8x128xf32>
    %268 = math.exp %267 : vector<8x128xf32>
    %cst_66 = arith.constant 1.000000e+00 : f32
    %269 = vector.broadcast %cst_66 : f32 to vector<8x128xf32>
    %270 = arith.addf %269, %268 : vector<8x128xf32>
    %271 = arith.divf %269, %270 : vector<8x128xf32>
    %272 = vector.extract_strided_slice %271 {offsets = [0, 0], sizes = [8, 32], strides = [1, 1]} : vector<8x128xf32> to vector<8x32xf32>
    %273 = vector.extract_strided_slice %271 {offsets = [0, 32], sizes = [8, 32], strides = [1, 1]} : vector<8x128xf32> to vector<8x32xf32>
    %274 = vector.extract_strided_slice %271 {offsets = [0, 96], sizes = [8, 32], strides = [1, 1]} : vector<8x128xf32> to vector<8x32xf32>
    %275 = vector.extract_strided_slice %266 {offsets = [0, 64], sizes = [8, 32], strides = [1, 1]} : vector<8x128xf32> to vector<8x32xf32>
    %276 = math.tanh %275 : vector<8x32xf32>
    %277 = arith.mulf %273, %258 : vector<8x32xf32>
    %278 = arith.mulf %272, %276 : vector<8x32xf32>
    %279 = arith.addf %277, %278 : vector<8x32xf32>
    %280 = math.tanh %279 : vector<8x32xf32>
    %281 = arith.mulf %274, %280 : vector<8x32xf32>
    %282 = arith.index_cast %c1_i32_64 : i32 to index
    %c0_67 = arith.constant 0 : index
    %c0_68 = arith.constant 0 : index
    %283 = vector.load %arg14[%282, %c0_67, %c0_68] : memref<8x8x32xf32, #tpu.memory_space<vmem>>, vector<1x8x32xf32>
    %284 = vector.shape_cast %283 : vector<1x8x32xf32> to vector<8x32xf32>
    %285 = vector.shape_cast %281 : vector<8x32xf32> to vector<1x8x32xf32>
    tpu.vector_store %arg14[%282, %c0_67, %c0_68], %285 {strides = array<i32>} : memref<8x8x32xf32, #tpu.memory_space<vmem>>, vector<1x8x32xf32>,
    %c2_i32_69 = arith.constant 2 : i32
    %cst_70 = arith.constant dense<0.000000e+00> : vector<8x128xf32>
    %286 = tpu.matmul %281, %4, %cst_70 {dimension_numbers = #tpu.dot_dimension_numbers<[1], [0], [0], [1], [0, 0, 1, 1], [], []>} : vector<8x32xf32>, vector<32x128xf32>, vector<8x128xf32> -> vector<8x128xf32>
    %287 = vector.broadcast %5 : vector<1x128xf32> to vector<8x128xf32>
    %288 = arith.addf %286, %287 : vector<8x128xf32>
    %289 = arith.negf %288 : vector<8x128xf32>
    %290 = math.exp %289 : vector<8x128xf32>
    %cst_71 = arith.constant 1.000000e+00 : f32
    %291 = vector.broadcast %cst_71 : f32 to vector<8x128xf32>
    %292 = arith.addf %291, %290 : vector<8x128xf32>
    %293 = arith.divf %291, %292 : vector<8x128xf32>
    %294 = vector.extract_strided_slice %293 {offsets = [0, 0], sizes = [8, 32], strides = [1, 1]} : vector<8x128xf32> to vector<8x32xf32>
    %295 = vector.extract_strided_slice %293 {offsets = [0, 32], sizes = [8, 32], strides = [1, 1]} : vector<8x128xf32> to vector<8x32xf32>
    %296 = vector.extract_strided_slice %293 {offsets = [0, 96], sizes = [8, 32], strides = [1, 1]} : vector<8x128xf32> to vector<8x32xf32>
    %297 = vector.extract_strided_slice %288 {offsets = [0, 64], sizes = [8, 32], strides = [1, 1]} : vector<8x128xf32> to vector<8x32xf32>
    %298 = math.tanh %297 : vector<8x32xf32>
    %299 = arith.mulf %295, %279 : vector<8x32xf32>
    %300 = arith.mulf %294, %298 : vector<8x32xf32>
    %301 = arith.addf %299, %300 : vector<8x32xf32>
    %302 = math.tanh %301 : vector<8x32xf32>
    %303 = arith.mulf %296, %302 : vector<8x32xf32>
    %304 = arith.index_cast %c2_i32_69 : i32 to index
    %c0_72 = arith.constant 0 : index
    %c0_73 = arith.constant 0 : index
    %305 = vector.load %arg14[%304, %c0_72, %c0_73] : memref<8x8x32xf32, #tpu.memory_space<vmem>>, vector<1x8x32xf32>
    %306 = vector.shape_cast %305 : vector<1x8x32xf32> to vector<8x32xf32>
    %307 = vector.shape_cast %303 : vector<8x32xf32> to vector<1x8x32xf32>
    tpu.vector_store %arg14[%304, %c0_72, %c0_73], %307 {strides = array<i32>} : memref<8x8x32xf32, #tpu.memory_space<vmem>>, vector<1x8x32xf32>,
    %c3_i32_74 = arith.constant 3 : i32
    %cst_75 = arith.constant dense<0.000000e+00> : vector<8x128xf32>
    %308 = tpu.matmul %303, %4, %cst_75 {dimension_numbers = #tpu.dot_dimension_numbers<[1], [0], [0], [1], [0, 0, 1, 1], [], []>} : vector<8x32xf32>, vector<32x128xf32>, vector<8x128xf32> -> vector<8x128xf32>
    %309 = vector.broadcast %5 : vector<1x128xf32> to vector<8x128xf32>
    %310 = arith.addf %308, %309 : vector<8x128xf32>
    %311 = arith.negf %310 : vector<8x128xf32>
    %312 = math.exp %311 : vector<8x128xf32>
    %cst_76 = arith.constant 1.000000e+00 : f32
    %313 = vector.broadcast %cst_76 : f32 to vector<8x128xf32>
    %314 = arith.addf %313, %312 : vector<8x128xf32>
    %315 = arith.divf %313, %314 : vector<8x128xf32>
    %316 = vector.extract_strided_slice %315 {offsets = [0, 0], sizes = [8, 32], strides = [1, 1]} : vector<8x128xf32> to vector<8x32xf32>
    %317 = vector.extract_strided_slice %315 {offsets = [0, 32], sizes = [8, 32], strides = [1, 1]} : vector<8x128xf32> to vector<8x32xf32>
    %318 = vector.extract_strided_slice %315 {offsets = [0, 96], sizes = [8, 32], strides = [1, 1]} : vector<8x128xf32> to vector<8x32xf32>
    %319 = vector.extract_strided_slice %310 {offsets = [0, 64], sizes = [8, 32], strides = [1, 1]} : vector<8x128xf32> to vector<8x32xf32>
    %320 = math.tanh %319 : vector<8x32xf32>
    %321 = arith.mulf %317, %301 : vector<8x32xf32>
    %322 = arith.mulf %316, %320 : vector<8x32xf32>
    %323 = arith.addf %321, %322 : vector<8x32xf32>
    %324 = math.tanh %323 : vector<8x32xf32>
    %325 = arith.mulf %318, %324 : vector<8x32xf32>
    %326 = arith.index_cast %c3_i32_74 : i32 to index
    %c0_77 = arith.constant 0 : index
    %c0_78 = arith.constant 0 : index
    %327 = vector.load %arg14[%326, %c0_77, %c0_78] : memref<8x8x32xf32, #tpu.memory_space<vmem>>, vector<1x8x32xf32>
    %328 = vector.shape_cast %327 : vector<1x8x32xf32> to vector<8x32xf32>
    %329 = vector.shape_cast %325 : vector<8x32xf32> to vector<1x8x32xf32>
    tpu.vector_store %arg14[%326, %c0_77, %c0_78], %329 {strides = array<i32>} : memref<8x8x32xf32, #tpu.memory_space<vmem>>, vector<1x8x32xf32>,
    %c4_i32_79 = arith.constant 4 : i32
    %cst_80 = arith.constant dense<0.000000e+00> : vector<8x128xf32>
    %330 = tpu.matmul %325, %4, %cst_80 {dimension_numbers = #tpu.dot_dimension_numbers<[1], [0], [0], [1], [0, 0, 1, 1], [], []>} : vector<8x32xf32>, vector<32x128xf32>, vector<8x128xf32> -> vector<8x128xf32>
    %331 = vector.broadcast %5 : vector<1x128xf32> to vector<8x128xf32>
    %332 = arith.addf %330, %331 : vector<8x128xf32>
    %333 = arith.negf %332 : vector<8x128xf32>
    %334 = math.exp %333 : vector<8x128xf32>
    %cst_81 = arith.constant 1.000000e+00 : f32
    %335 = vector.broadcast %cst_81 : f32 to vector<8x128xf32>
    %336 = arith.addf %335, %334 : vector<8x128xf32>
    %337 = arith.divf %335, %336 : vector<8x128xf32>
    %338 = vector.extract_strided_slice %337 {offsets = [0, 0], sizes = [8, 32], strides = [1, 1]} : vector<8x128xf32> to vector<8x32xf32>
    %339 = vector.extract_strided_slice %337 {offsets = [0, 32], sizes = [8, 32], strides = [1, 1]} : vector<8x128xf32> to vector<8x32xf32>
    %340 = vector.extract_strided_slice %337 {offsets = [0, 96], sizes = [8, 32], strides = [1, 1]} : vector<8x128xf32> to vector<8x32xf32>
    %341 = vector.extract_strided_slice %332 {offsets = [0, 64], sizes = [8, 32], strides = [1, 1]} : vector<8x128xf32> to vector<8x32xf32>
    %342 = math.tanh %341 : vector<8x32xf32>
    %343 = arith.mulf %339, %323 : vector<8x32xf32>
    %344 = arith.mulf %338, %342 : vector<8x32xf32>
    %345 = arith.addf %343, %344 : vector<8x32xf32>
    %346 = math.tanh %345 : vector<8x32xf32>
    %347 = arith.mulf %340, %346 : vector<8x32xf32>
    %348 = arith.index_cast %c4_i32_79 : i32 to index
    %c0_82 = arith.constant 0 : index
    %c0_83 = arith.constant 0 : index
    %349 = vector.load %arg14[%348, %c0_82, %c0_83] : memref<8x8x32xf32, #tpu.memory_space<vmem>>, vector<1x8x32xf32>
    %350 = vector.shape_cast %349 : vector<1x8x32xf32> to vector<8x32xf32>
    %351 = vector.shape_cast %347 : vector<8x32xf32> to vector<1x8x32xf32>
    tpu.vector_store %arg14[%348, %c0_82, %c0_83], %351 {strides = array<i32>} : memref<8x8x32xf32, #tpu.memory_space<vmem>>, vector<1x8x32xf32>,
    %c5_i32_84 = arith.constant 5 : i32
    %cst_85 = arith.constant dense<0.000000e+00> : vector<8x128xf32>
    %352 = tpu.matmul %347, %4, %cst_85 {dimension_numbers = #tpu.dot_dimension_numbers<[1], [0], [0], [1], [0, 0, 1, 1], [], []>} : vector<8x32xf32>, vector<32x128xf32>, vector<8x128xf32> -> vector<8x128xf32>
    %353 = vector.broadcast %5 : vector<1x128xf32> to vector<8x128xf32>
    %354 = arith.addf %352, %353 : vector<8x128xf32>
    %355 = arith.negf %354 : vector<8x128xf32>
    %356 = math.exp %355 : vector<8x128xf32>
    %cst_86 = arith.constant 1.000000e+00 : f32
    %357 = vector.broadcast %cst_86 : f32 to vector<8x128xf32>
    %358 = arith.addf %357, %356 : vector<8x128xf32>
    %359 = arith.divf %357, %358 : vector<8x128xf32>
    %360 = vector.extract_strided_slice %359 {offsets = [0, 0], sizes = [8, 32], strides = [1, 1]} : vector<8x128xf32> to vector<8x32xf32>
    %361 = vector.extract_strided_slice %359 {offsets = [0, 32], sizes = [8, 32], strides = [1, 1]} : vector<8x128xf32> to vector<8x32xf32>
    %362 = vector.extract_strided_slice %359 {offsets = [0, 96], sizes = [8, 32], strides = [1, 1]} : vector<8x128xf32> to vector<8x32xf32>
    %363 = vector.extract_strided_slice %354 {offsets = [0, 64], sizes = [8, 32], strides = [1, 1]} : vector<8x128xf32> to vector<8x32xf32>
    %364 = math.tanh %363 : vector<8x32xf32>
    %365 = arith.mulf %361, %345 : vector<8x32xf32>
    %366 = arith.mulf %360, %364 : vector<8x32xf32>
    %367 = arith.addf %365, %366 : vector<8x32xf32>
    %368 = math.tanh %367 : vector<8x32xf32>
    %369 = arith.mulf %362, %368 : vector<8x32xf32>
    %370 = arith.index_cast %c5_i32_84 : i32 to index
    %c0_87 = arith.constant 0 : index
    %c0_88 = arith.constant 0 : index
    %371 = vector.load %arg14[%370, %c0_87, %c0_88] : memref<8x8x32xf32, #tpu.memory_space<vmem>>, vector<1x8x32xf32>
    %372 = vector.shape_cast %371 : vector<1x8x32xf32> to vector<8x32xf32>
    %373 = vector.shape_cast %369 : vector<8x32xf32> to vector<1x8x32xf32>
    tpu.vector_store %arg14[%370, %c0_87, %c0_88], %373 {strides = array<i32>} : memref<8x8x32xf32, #tpu.memory_space<vmem>>, vector<1x8x32xf32>,
    %c6_i32_89 = arith.constant 6 : i32
    %cst_90 = arith.constant dense<0.000000e+00> : vector<8x128xf32>
    %374 = tpu.matmul %369, %4, %cst_90 {dimension_numbers = #tpu.dot_dimension_numbers<[1], [0], [0], [1], [0, 0, 1, 1], [], []>} : vector<8x32xf32>, vector<32x128xf32>, vector<8x128xf32> -> vector<8x128xf32>
    %375 = vector.broadcast %5 : vector<1x128xf32> to vector<8x128xf32>
    %376 = arith.addf %374, %375 : vector<8x128xf32>
    %377 = arith.negf %376 : vector<8x128xf32>
    %378 = math.exp %377 : vector<8x128xf32>
    %cst_91 = arith.constant 1.000000e+00 : f32
    %379 = vector.broadcast %cst_91 : f32 to vector<8x128xf32>
    %380 = arith.addf %379, %378 : vector<8x128xf32>
    %381 = arith.divf %379, %380 : vector<8x128xf32>
    %382 = vector.extract_strided_slice %381 {offsets = [0, 0], sizes = [8, 32], strides = [1, 1]} : vector<8x128xf32> to vector<8x32xf32>
    %383 = vector.extract_strided_slice %381 {offsets = [0, 32], sizes = [8, 32], strides = [1, 1]} : vector<8x128xf32> to vector<8x32xf32>
    %384 = vector.extract_strided_slice %381 {offsets = [0, 96], sizes = [8, 32], strides = [1, 1]} : vector<8x128xf32> to vector<8x32xf32>
    %385 = vector.extract_strided_slice %376 {offsets = [0, 64], sizes = [8, 32], strides = [1, 1]} : vector<8x128xf32> to vector<8x32xf32>
    %386 = math.tanh %385 : vector<8x32xf32>
    %387 = arith.mulf %383, %367 : vector<8x32xf32>
    %388 = arith.mulf %382, %386 : vector<8x32xf32>
    %389 = arith.addf %387, %388 : vector<8x32xf32>
    %390 = math.tanh %389 : vector<8x32xf32>
    %391 = arith.mulf %384, %390 : vector<8x32xf32>
    %392 = arith.index_cast %c6_i32_89 : i32 to index
    %c0_92 = arith.constant 0 : index
    %c0_93 = arith.constant 0 : index
    %393 = vector.load %arg14[%392, %c0_92, %c0_93] : memref<8x8x32xf32, #tpu.memory_space<vmem>>, vector<1x8x32xf32>
    %394 = vector.shape_cast %393 : vector<1x8x32xf32> to vector<8x32xf32>
    %395 = vector.shape_cast %391 : vector<8x32xf32> to vector<1x8x32xf32>
    tpu.vector_store %arg14[%392, %c0_92, %c0_93], %395 {strides = array<i32>} : memref<8x8x32xf32, #tpu.memory_space<vmem>>, vector<1x8x32xf32>,
    %c7_i32_94 = arith.constant 7 : i32
    %cst_95 = arith.constant dense<0.000000e+00> : vector<8x128xf32>
    %396 = tpu.matmul %391, %4, %cst_95 {dimension_numbers = #tpu.dot_dimension_numbers<[1], [0], [0], [1], [0, 0, 1, 1], [], []>} : vector<8x32xf32>, vector<32x128xf32>, vector<8x128xf32> -> vector<8x128xf32>
    %397 = vector.broadcast %5 : vector<1x128xf32> to vector<8x128xf32>
    %398 = arith.addf %396, %397 : vector<8x128xf32>
    %399 = arith.negf %398 : vector<8x128xf32>
    %400 = math.exp %399 : vector<8x128xf32>
    %cst_96 = arith.constant 1.000000e+00 : f32
    %401 = vector.broadcast %cst_96 : f32 to vector<8x128xf32>
    %402 = arith.addf %401, %400 : vector<8x128xf32>
    %403 = arith.divf %401, %402 : vector<8x128xf32>
    %404 = vector.extract_strided_slice %403 {offsets = [0, 0], sizes = [8, 32], strides = [1, 1]} : vector<8x128xf32> to vector<8x32xf32>
    %405 = vector.extract_strided_slice %403 {offsets = [0, 32], sizes = [8, 32], strides = [1, 1]} : vector<8x128xf32> to vector<8x32xf32>
    %406 = vector.extract_strided_slice %403 {offsets = [0, 96], sizes = [8, 32], strides = [1, 1]} : vector<8x128xf32> to vector<8x32xf32>
    %407 = vector.extract_strided_slice %398 {offsets = [0, 64], sizes = [8, 32], strides = [1, 1]} : vector<8x128xf32> to vector<8x32xf32>
    %408 = math.tanh %407 : vector<8x32xf32>
    %409 = arith.mulf %405, %389 : vector<8x32xf32>
    %410 = arith.mulf %404, %408 : vector<8x32xf32>
    %411 = arith.addf %409, %410 : vector<8x32xf32>
    %412 = math.tanh %411 : vector<8x32xf32>
    %413 = arith.mulf %406, %412 : vector<8x32xf32>
    %414 = arith.index_cast %c7_i32_94 : i32 to index
    %c0_97 = arith.constant 0 : index
    %c0_98 = arith.constant 0 : index
    %415 = vector.load %arg14[%414, %c0_97, %c0_98] : memref<8x8x32xf32, #tpu.memory_space<vmem>>, vector<1x8x32xf32>
    %416 = vector.shape_cast %415 : vector<1x8x32xf32> to vector<8x32xf32>
    %417 = vector.shape_cast %413 : vector<8x32xf32> to vector<1x8x32xf32>
    tpu.vector_store %arg14[%414, %c0_97, %c0_98], %417 {strides = array<i32>} : memref<8x8x32xf32, #tpu.memory_space<vmem>>, vector<1x8x32xf32>,
    %c7_i32_99 = arith.constant 7 : i32
    %c0_100 = arith.constant 0 : index
    %c0_101 = arith.constant 0 : index
    %c0_102 = arith.constant 0 : index
    %418 = vector.load %arg14[%c0_100, %c0_101, %c0_102] : memref<8x8x32xf32, #tpu.memory_space<vmem>>, vector<8x8x32xf32>
    %419 = vector.shape_cast %418 : vector<8x8x32xf32> to vector<64x32xf32>
    %cst_103 = arith.constant dense<0.000000e+00> : vector<64x16xf32>
    %420 = tpu.matmul %419, %6, %cst_103 {dimension_numbers = #tpu.dot_dimension_numbers<[1], [0], [0], [1], [0, 0, 1, 1], [], []>} : vector<64x32xf32>, vector<32x16xf32>, vector<64x16xf32> -> vector<64x16xf32>
    %421 = vector.broadcast %7 : vector<1x16xf32> to vector<64x16xf32>
    %422 = arith.addf %420, %421 : vector<64x16xf32>
    %423 = vector.shape_cast %422 : vector<64x16xf32> to vector<8x8x16xf32>
    %c0_104 = arith.constant 0 : index
    %c0_105 = arith.constant 0 : index
    %c0_106 = arith.constant 0 : index
    %424 = vector.load %arg12[%c0_104, %c0_105, %c0_106] : memref<8x8x16xf32, #tpu.memory_space<vmem>>, vector<8x8x16xf32>
    tpu.vector_store %arg12[%c0_104, %c0_105, %c0_106], %423 {strides = array<i32>} : memref<8x8x16xf32, #tpu.memory_space<vmem>>, vector<8x8x16xf32>,
    return
  }
  func.func @transform_0(%arg0: i32) -> (i32, i32) {
    %c0_i32 = arith.constant 0 : i32
    %c0_i32_0 = arith.constant 0 : i32
    %c0_i32_1 = arith.constant 0 : i32
    return %c0_i32, %c0_i32_0 : i32, i32
  }
  func.func @transform_1(%arg0: i32) -> (i32, i32, i32) {
    %c0_i32 = arith.constant 0 : i32
    %c0_i32_0 = arith.constant 0 : i32
    %c0_i32_1 = arith.constant 0 : i32
    %c0_i32_2 = arith.constant 0 : i32
    return %c0_i32, %c0_i32_0, %c0_i32_1 : i32, i32, i32
  }
  func.func @transform_2(%arg0: i32) -> (i32, i32) {
    %c0_i32 = arith.constant 0 : i32
    %c0_i32_0 = arith.constant 0 : i32
    %c0_i32_1 = arith.constant 0 : i32
    return %c0_i32, %c0_i32_0 : i32, i32
  }
  func.func @transform_3(%arg0: i32) -> (i32, i32) {
    %c0_i32 = arith.constant 0 : i32
    %c0_i32_0 = arith.constant 0 : i32
    %c0_i32_1 = arith.constant 0 : i32
    return %c0_i32, %c0_i32_0 : i32, i32
  }
  func.func @transform_4(%arg0: i32) -> (i32, i32) {
    %c0_i32 = arith.constant 0 : i32
    %c0_i32_0 = arith.constant 0 : i32
    %c0_i32_1 = arith.constant 0 : i32
    return %c0_i32, %c0_i32_0 : i32, i32
  }
  func.func @transform_5(%arg0: i32) -> (i32, i32) {
    %c0_i32 = arith.constant 0 : i32
    %c0_i32_0 = arith.constant 0 : i32
    %c0_i32_1 = arith.constant 0 : i32
    return %c0_i32, %c0_i32_0 : i32, i32
  }
  func.func @transform_6(%arg0: i32) -> (i32, i32) {
    %c0_i32 = arith.constant 0 : i32
    %c0_i32_0 = arith.constant 0 : i32
    %c0_i32_1 = arith.constant 0 : i32
    return %c0_i32, %c0_i32_0 : i32, i32
  }
  func.func @transform_7(%arg0: i32) -> (i32, i32) {
    %c0_i32 = arith.constant 0 : i32
    %c0_i32_0 = arith.constant 0 : i32
    %c0_i32_1 = arith.constant 0 : i32
    return %c0_i32, %c0_i32_0 : i32, i32
  }
  func.func @transform_8(%arg0: i32) -> (i32, i32) {
    %c0_i32 = arith.constant 0 : i32
    %c0_i32_0 = arith.constant 0 : i32
    %c0_i32_1 = arith.constant 0 : i32
    return %c0_i32, %c0_i32_0 : i32, i32
  }
  func.func @transform_9(%arg0: i32) -> (i32, i32) {
    %c0_i32 = arith.constant 0 : i32
    %c0_i32_0 = arith.constant 0 : i32
    %c0_i32_1 = arith.constant 0 : i32
    return %c0_i32, %c0_i32_0 : i32, i32
  }
  func.func @transform_10(%arg0: i32) -> (i32, i32) {
    %c0_i32 = arith.constant 0 : i32
    %c0_i32_0 = arith.constant 0 : i32
    %c0_i32_1 = arith.constant 0 : i32
    return %c0_i32, %c0_i32_0 : i32, i32
  }
  func.func @transform_11(%arg0: i32) -> (i32, i32, i32) {
    %c0_i32 = arith.constant 0 : i32
    %c0_i32_0 = arith.constant 0 : i32
    %c0_i32_1 = arith.constant 0 : i32
    %c0_i32_2 = arith.constant 0 : i32
    return %c0_i32, %c0_i32_0, %c0_i32_1 : i32, i32, i32
  }
}

</mosaic_0001>

<bundles_post_ra>
// kernel: tpu_custom_call.1
= control target key start
LH: loop header
LB: loop body
LE: loop exit
PB: predicated region body
PF: predicated region fallthrough
CT: control target
= control target key end

     0   :  { %16 = vsyncpa [#allocation5], 0  ;;  %s2156_s0 = inlined_call_operand.vmem [shape: s32[8,1], index: 0, kind: input, shape index: {}]   ;;  %s2157_s1 = inlined_call_operand.hbm [shape: f32[8,8,16], index: 1, kind: input, shape index: {}]   ;;  %s2158_s2 = inlined_call_operand.vmem [shape: f32[16,128], index: 2, kind: input, shape index: {}]   ;;  %s2159_s3 = inlined_call_operand.vmem [shape: f32[32,128], index: 3, kind: input, shape index: {}]   ;;  %s2160_s4 = inlined_call_operand.vmem [shape: f32[1,128], index: 4, kind: input, shape index: {}]   ;;  %s2161_s5 = inlined_call_operand.hbm [shape: f32[32,128], index: 5, kind: input, shape index: {}]   ;;  %s2162_s6 = inlined_call_operand.hbm [shape: f32[1,128], index: 6, kind: input, shape index: {}]   ;;  %s2163_s7 = inlined_call_operand.hbm [shape: f32[32,128], index: 7, kind: input, shape index: {}]   ;;  %s2164_s8 = inlined_call_operand.hbm [shape: f32[1,128], index: 8, kind: input, shape index: {}]   ;;  %s2165_s9 = inlined_call_operand.vmem [shape: f32[32,16], index: 9, kind: input, shape index: {}]   ;;  %s2166_s10 = inlined_call_operand.vmem [shape: f32[1,16], index: 10, kind: input, shape index: {}]   ;;  %s2167_s11 = inlined_call_operand.hbm [shape: f32[8,8,16], index: 11, kind: output, shape index: {}]  }
   0x1   :  { %17 = vsyncpa [#allocation8], 0 }
   0x2   :  { %18 = vsyncpa [#allocation11], 0 }
   0x3   :  { %19 = vsyncpa [#allocation6], 0  ;;  %s45_s19 = sshll.u32 %s2161_s5, 4  ;;  %s1790_s20 = smov [#allocation7]   ;;  %s46_s19 = int_to_ptr.hbm [resolvable:$true] %s45_s19 }
   0x4   :  { %s47_s21 = sshll.u32 %s1790_s20, 4  ;;  %s69_s24 = sshll.u32 %s2163_s7, 4  ;;  %s48_s21 = int_to_ptr.vmem [resolvable:$true] %s47_s21  ;;  %s70_s24 = int_to_ptr.hbm [resolvable:$true] %s69_s24 }
   0x5   :  { %s1791_s25 = smov 128   ;;  %s1792_s26 = smov 8  }
   0x6   :  { %53 = dma.hbm_to_vmem [thread:$0]  %s46_s19, 512, %s48_s21, [#allocation8], %s1791_s25, %s1791_s25, %s1792_s26  }
   0x7   :  { %s1793_s27 = smov [#allocation10]   ;;  %s26_s5 = sshll.u32 %s2157_s1, 4  ;;  %s27_s5 = int_to_ptr.hbm [resolvable:$true] %s26_s5 }
   0x8   :  { %s71_s28 = sshll.u32 %s1793_s27, 4  ;;  %s59_s13 = sshll.u32 %s2162_s6, 4  ;;  %s72_s28 = int_to_ptr.vmem [resolvable:$true] %s71_s28  ;;  %s60_s13 = int_to_ptr.hbm [resolvable:$true] %s59_s13 }
   0x9   :  { %77 = dma.hbm_to_vmem [thread:$0]  %s70_s24, 512, %s72_s28, [#allocation11], %s1791_s25, %s1791_s25, %s1792_s26  }
   0xa   :  { %s1794_s14 = smov [#allocation4]   ;;  %s1795_s16 = smov [#allocation9]  }
   0xb   :  { %s28_s15 = sshll.u32 %s1794_s14, 4  ;;  %s61_s1 = sshll.u32 %s1795_s16, 4  ;;  %s29_s15 = int_to_ptr.vmem [resolvable:$true] %s28_s15  ;;  %s62_s1 = int_to_ptr.vmem [resolvable:$true] %s61_s1 }
   0xc   :  { %34 = dma.hbm_to_vmem [thread:$0]  %s27_s5, 1024, %s29_s15, [#allocation5], %s1791_s25, %s1791_s25, %s1792_s26  }
   0xd   :  { %s83_s19 = sshll.u32 %s2164_s8, 4  ;;  %s1796_s20 = smov [#allocation12]   ;;  %s84_s19 = int_to_ptr.hbm [resolvable:$true] %s83_s19 }
   0xe   :  { %64 = dma.hbm_to_vmem [thread:$0]  %s60_s13, 16, %s62_s1, [#allocation8]  }
   0xf   :  { %s85_s21 = sshll.u32 %s1796_s20, 4  ;;  %s86_s21 = int_to_ptr.vmem [resolvable:$true] %s85_s21 }
  0x10   :  { %88 = dma.hbm_to_vmem [thread:$0]  %s84_s19, 16, %s86_s21, [#allocation11]  }
  0x11   :  { %1782 = dma.done.wait [#allocation5], 1024  }
  0x12   :  { %1783 = vsyncadd [#allocation5], 4294966272 }
  0x13   :  { %1784 = dma.done.wait [#allocation8], 528  }
  0x14   :  { %1785 = vsyncadd [#allocation8], 4294966768 }
  0x15   :  { %1786 = dma.done.wait [#allocation11], 528  }
  0x16   :  { %1787 = vsyncadd [#allocation11], 4294966768  ;;  %v1889_v0 = vld [vmem:[%s2159_s3 + $0x18] sm:$0xff]  ;;  %v142_v1 = vld [vmem:[%s2158_s2 + $0x8] sm:$0xff]  ;;  %vm147_vm0 = vcmask 130048   ;;  %v1797_v7 = vmov 0.0  }
  0x17   :  { %v1897_v2 = vld [vmem:[%s2159_s3 + $0x10] sm:$0xff]  ;;  %238 = vmatpush.msra.mxu1 %v1889_v0  ;;  %186 = vmatpush.msra.mxu0 %v142_v1  ;;  %v141_v3 = vld [vmem:[%s2158_s2] sm:$0xff]  ;;  %v1906_v5 = vld [vmem:[%s2159_s3 + $0x8] sm:$0xff]  ;;  %s1798_s13 = smov 64   ;;  %v1800_v29 = vmov 0   ;;  %vm222_vm7 = vcmask 261120  }
  0x18   :  { %v133_v4 = vld [vmem:[#allocation4] sm:$0xff]  ;;  %311 = vmatpush.msra.mxu2 %v1889_v0  ;;  %384 = vmatpush.msra.mxu3 %v1889_v0  ;;  %v134_v40 = vld [vmem:[#allocation4 + $0x8] sm:$0xff]  ;;  %s1421_s24 = sshll.u32 %s2167_s11, 4  ;;  %s1422_s24 = int_to_ptr.hbm [resolvable:$true] %s1421_s24 }
  0x19   :  { %239 = vmatpush.msra.mxu1 %v1897_v2  ;;  %187 = vmatpush.msra.mxu0 %v141_v3  ;;  %v1915_v6 = vld [vmem:[%s2159_s3] sm:$0xff] }
  0x1a   :  { %1436 = vmatmul.msk.f32.vlgmr.msra.gmra.mxu0 %vm147_vm0, %v133_v4  ;;  %312 = vmatpush.msra.mxu2 %v1897_v2  ;;  %v1944_v8 = vld [vmem:[%s2160_s4] ss:$0 sm:$0xff]  ;;  %s1799_s4 = smov 32  }
  0x1b   :  { %240 = vmatpush.msra.mxu1 %v1906_v5  ;;  %385 = vmatpush.msra.mxu3 %v1897_v2  ;;  %v1955_v34 = vld [vmem:[%s2156_s0] sm:$0xff] }
  0x1c   :  { %313 = vmatpush.msra.mxu2 %v1906_v5  ;;  %1503 = vset.pattern.permute.xlu1 %v1800_v29  ;;  %vm284_vm5 = vcmp.gt.s32.totalorder %v1955_v34, 0  ;;  %vm357_vm8 = vcmp.gt.s32.totalorder %v1955_v34, 1  ;;  %vm430_vm14 = vcmp.gt.s32.totalorder %v1955_v34, 2 }
  0x1d   :  { %241 = vmatpush.msra.mxu1 %v1915_v6  ;;  %386 = vmatpush.msra.mxu3 %v1906_v5  ;;  %v285_v35 = vsel %vm284_vm5, 1, %v1800_v29  ;;  %v358_v50 = vsel %vm357_vm8, 1, %v1800_v29  ;;  %vm503_vm5 = vcmp.gt.s32.totalorder %v1955_v34, 3 }
  0x1e   :  { %242 = vmatmul.f32.vlgmr.msra.gmra.mxu1 %v1797_v7  ;;  %314 = vmatpush.msra.mxu2 %v1915_v6 }
  0x1f   :  { %387 = vmatpush.msra.mxu3 %v1915_v6  ;;  %457 = vmatpush.msrb.mxu1 %v1889_v0 }
  0x20   :  { %530 = vmatpush.msrb.mxu2 %v1889_v0  ;;  %1504 = vset.pattern.permute.xlu2 %v1800_v29 }
  0x21   :  { %603 = vmatpush.msrb.mxu3 %v1889_v0  ;;  %458 = vmatpush.msrb.mxu1 %v1897_v2 }
  0x22   :  { %531 = vmatpush.msrb.mxu2 %v1897_v2  ;;  %1505 = vset.pattern.permute.xlu0 %v1800_v29 }
  0x23   :  { %604 = vmatpush.msrb.mxu3 %v1897_v2  ;;  %459 = vmatpush.msrb.mxu1 %v1906_v5 }
  0x24   :  { %532 = vmatpush.msrb.mxu2 %v1906_v5  ;;  %1437 = vmatmul.msk.f32.gmra.mxu0 %vm147_vm0, %v134_v40 }
  0x25   :  { %605 = vmatpush.msrb.mxu3 %v1906_v5  ;;  %460 = vmatpush.msrb.mxu1 %v1915_v6 }
  0x26   :  { %533 = vmatpush.msrb.mxu2 %v1915_v6 }
  0x27   :  { %606 = vmatpush.msrb.mxu3 %v1915_v6  ;;  %676 = vmatpush.msra.mxu1 %v1889_v0 }
  0x29   :  { %677 = vmatpush.msra.mxu1 %v1897_v2 }
  0x2b   :  { %678 = vmatpush.msra.mxu1 %v1906_v5 }
  0x2d   :  { %679 = vmatpush.msra.mxu1 %v1915_v6 }
  0x97   :  { %v189_v9 = vpop.f32.mrf.mxu0 }
  0x98   :  { %v190_v10 = vadd.f32 %v1944_v8, %v189_v9  ;;  %v135_v9 = vld [vmem:[#allocation4 + $0x10] sm:$0xff] }
  0x99   :  { %1438 = vmatmul.msk.f32.gmra.mxu0 %vm147_vm0, %v135_v9 }
  0x9b   :  { %v243_v11 = vpop.f32.mrf.mxu1 }
  0x9c   :  { %v246_v12 = vadd.f32 %v243_v11, %v190_v10 }
  0x9e   :  { %1510 = vtanh.f32 %v246_v12  ;;  %v1444_v14 = vmul.f32 -1.442695, %v246_v12 }
  0xa0   :  { %1512 = vpow2.f32 %v1444_v14 }
  0xa1   :  { %v192_v42 = vpop.f32.mrf.mxu0 }
  0xa2   :  { %v193_v43 = vadd.f32 %v1944_v8, %v192_v42 }
  0xa4   :  { %v1511_v13 = vpop.eup %1510 }
  0xa5   :  { %269 = vrot.lane.b32.xlu0 %v1511_v13, %s1798_s13 }
  0xa6   :  { %v1513_v15 = vpop.eup %1512 }
  0xa7   :  { %v250_v16 = vadd.f32 1.0, %v1513_v15 }
  0xa9   :  { %1514 = vrcp.f32 %v250_v16  ;;  %v262_v22 = vand.u32 2147483648, %v250_v16  ;;  %vm256_vm2 = vweird.f32 %v250_v16  ;;  %v260_v23 = vand.u32 2147483647, %v250_v16 }
  0xab   :  { %v263_v25 = vor.u32 1.1754944e-38, %v262_v22  ;;  %vm261_vm4 = vcmp.eq.f32.partialorder %v260_v23, 8.507059e+37 }
  0xaf   :  { %v1515_v17 = vpop.eup %1514 }
  0xb0   :  { %v252_v18 = vmul.f32 %v1515_v17, %v250_v16  ;;  %vm257_vm1 = vweird.f32 %v1515_v17  ;;  %v431_v16 = vsel %vm430_vm14, 1, %v1800_v29 }
  0xb1   :  { %vm258_vm3 = vmor %vm256_vm2, %vm257_vm1 }
  0xb2   :  { %v253_v19 = vsub.f32 1.0, %v252_v18 }
  0xb4   :  { %v254_v20 = vmul.f32 %v1515_v17, %v253_v19 }
  0xb6   :  { %v255_v21 = vadd.f32 %v1515_v17, %v254_v20 }
  0xb8   :  { %v259_v24 = vsel %vm258_vm3, %v1515_v17, %v255_v21 }
  0xb9   :  { %v264_v27 = vsel %vm261_vm4, %v263_v25, %v259_v24 }
  0xba   :  { %v267_v30 = vmul.f32 0.0, %v264_v27 }
 0x116   :  { %v195_v11 = vpop.f32.mrf.mxu0 }
 0x117   :  { %v270_v26 = vpop.permute.xlu0 %269  ;;  %v196_v12 = vadd.f32 %v1944_v8, %v195_v11 }
 0x118   :  { %v272_v28 = vmul.f32 %v270_v26, %v264_v27 }
 0x11a   :  { %274 = vrot.lane.b32.xlu0 %v272_v28, %s1799_s4 }
 0x18c   :  { %v275_v31 = vpop.permute.xlu0 %274 }
 0x18d   :  { %v277_v32 = vadd.f32 %v275_v31, %v267_v30 }
 0x18f   :  { %1516 = vtanh.f32 %v277_v32 }
 0x195   :  { %v1517_v33 = vpop.eup %1516 }
 0x196   :  { %280 = vrot.lane.b32.xlu1 %v1517_v33, %s1798_s13 }
 0x19e   :  { %287 = vperm.xlu1 %1503, %v285_v35  }
 0x208   :  { %v281_v36 = vpop.permute.xlu1 %280 }
 0x209   :  { %v283_v37 = vmul.f32 %v281_v36, %v264_v27 }
 0x210   :  { %v288_v38 = vpop.permute.xlu1 %287 }
 0x211   :  { %vm289_vm6 = vcmp.eq.s32.totalorder %v288_v38, 1 }
 0x212   :  { %v290_v39 = vsel %vm289_vm6, %v283_v37, 0.0  ;;  %v291_v63 = vsel %vm289_vm6, %v277_v32, 0.0  ;;  %vm576_vm6 = vcmp.gt.s32.totalorder %v1955_v34, 4 }
 0x213   :  { %295 = vrot.lane.b32.xlu2 %v290_v39, %s1799_s4 }
 0x26d   :  { %v296_v41 = vpop.permute.xlu2 %295 }
 0x26e   :  { %1445 = vmatmul.msk.f32.vlgmr.msra.gmra.mxu2 %vm222_vm7, %v296_v41 }
 0x26f   :  { %749 = vmatpush.msra.mxu2 %v1889_v0 }
 0x271   :  { %750 = vmatpush.msra.mxu2 %v1897_v2 }
 0x273   :  { %751 = vmatpush.msra.mxu2 %v1906_v5 }
 0x275   :  { %752 = vmatpush.msra.mxu2 %v1915_v6 }
 0x2f1   :  { %v316_v44 = vpop.f32.mrf.mxu2 }
 0x2f2   :  { %v319_v45 = vadd.f32 %v316_v44, %v193_v43 }
 0x2f4   :  { %1518 = vtanh.f32 %v319_v45  ;;  %v1446_v47 = vmul.f32 -1.442695, %v319_v45 }
 0x2f6   :  { %1520 = vpow2.f32 %v1446_v47 }
 0x2fa   :  { %v1519_v46 = vpop.eup %1518 }
 0x2fb   :  { %342 = vrot.lane.b32.xlu2 %v1519_v46, %s1798_s13 }
 0x2fc   :  { %v1521_v48 = vpop.eup %1520 }
 0x2fd   :  { %v323_v49 = vadd.f32 1.0, %v1521_v48 }
 0x2ff   :  { %1522 = vrcp.f32 %v323_v49  ;;  %v335_v56 = vand.u32 2147483648, %v323_v49  ;;  %vm329_vm10 = vweird.f32 %v323_v49  ;;  %v333_v57 = vand.u32 2147483647, %v323_v49 }
 0x301   :  { %v336_v59 = vor.u32 1.1754944e-38, %v335_v56  ;;  %vm334_vm12 = vcmp.eq.f32.partialorder %v333_v57, 8.507059e+37 }
 0x303   :  { %360 = vperm.xlu2 %1504, %v358_v50  }
 0x305   :  { %v1523_v51 = vpop.eup %1522 }
 0x306   :  { %v325_v52 = vmul.f32 %v1523_v51, %v323_v49  ;;  %vm330_vm9 = vweird.f32 %v1523_v51 }
 0x307   :  { %vm331_vm11 = vmor %vm329_vm10, %vm330_vm9 }
 0x308   :  { %v326_v53 = vsub.f32 1.0, %v325_v52 }
 0x30a   :  { %v327_v54 = vmul.f32 %v1523_v51, %v326_v53  ;;  %v504_v53 = vsel %vm503_vm5, 1, %v1800_v29 }
 0x30c   :  { %v328_v55 = vadd.f32 %v1523_v51, %v327_v54  ;;  %v577_v54 = vsel %vm576_vm6, 1, %v1800_v29 }
 0x30e   :  { %v332_v58 = vsel %vm331_vm11, %v1523_v51, %v328_v55 }
 0x30f   :  { %v337_v61 = vsel %vm334_vm12, %v336_v59, %v332_v58 }
 0x310   :  { %v340_v0 = vmul.f32 %v337_v61, %v291_v63 }
 0x355   :  { %v343_v60 = vpop.permute.xlu2 %342 }
 0x356   :  { %v345_v62 = vmul.f32 %v343_v60, %v337_v61 }
 0x358   :  { %347 = vrot.lane.b32.xlu0 %v345_v62, %s1799_s4 }
 0x35d   :  { %v361_v4 = vpop.permute.xlu2 %360 }
 0x35e   :  { %vm362_vm13 = vcmp.eq.s32.totalorder %v361_v4, 1 }
 0x3ca   :  { %v348_v1 = vpop.permute.xlu0 %347 }
 0x3cb   :  { %v350_v2 = vadd.f32 %v348_v1, %v340_v0 }
 0x3cd   :  { %1524 = vtanh.f32 %v350_v2  ;;  %v364_v33 = vsel %vm362_vm13, %v350_v2, %v291_v63 }
 0x3d3   :  { %v1525_v3 = vpop.eup %1524 }
 0x3d4   :  { %353 = vrot.lane.b32.xlu1 %v1525_v3, %s1798_s13 }
 0x446   :  { %v354_v5 = vpop.permute.xlu1 %353 }
 0x447   :  { %v356_v6 = vmul.f32 %v354_v5, %v337_v61 }
 0x449   :  { %v363_v7 = vsel %vm362_vm13, %v356_v6, %v290_v39  ;;  %v136_v39 = vld [vmem:[#allocation4 + $0x18] sm:$0xff] }
 0x44a   :  { %368 = vrot.lane.b32.xlu0 %v363_v7, %s1799_s4  ;;  %1439 = vmatmul.msk.f32.gmra.mxu0 %vm147_vm0, %v136_v39 }
 0x4bc   :  { %v369_v10 = vpop.permute.xlu0 %368 }
 0x4bd   :  { %1447 = vmatmul.msk.f32.vlgmr.msra.gmra.mxu3 %vm222_vm7, %v369_v10 }
 0x4c7   :  { %v198_v45 = vpop.f32.mrf.mxu0 }
 0x4c8   :  { %v199_v46 = vadd.f32 %v1944_v8, %v198_v45 }
 0x540   :  { %v389_v13 = vpop.f32.mrf.mxu3 }
 0x541   :  { %v392_v14 = vadd.f32 %v389_v13, %v196_v12  ;;  %v137_v13 = vld [vmem:[#allocation4 + $0x20] sm:$0xff] }
 0x542   :  { %1440 = vmatmul.msk.f32.gmra.mxu0 %vm147_vm0, %v137_v13 }
 0x543   :  { %1526 = vtanh.f32 %v392_v14  ;;  %v1448_v17 = vmul.f32 -1.442695, %v392_v14 }
 0x545   :  { %1528 = vpow2.f32 %v1448_v17 }
 0x549   :  { %v1527_v15 = vpop.eup %1526 }
 0x54a   :  { %415 = vrot.lane.b32.xlu1 %v1527_v15, %s1798_s13 }
 0x54b   :  { %v1529_v18 = vpop.eup %1528 }
 0x54c   :  { %v396_v19 = vadd.f32 1.0, %v1529_v18 }
 0x54e   :  { %1530 = vrcp.f32 %v396_v19  ;;  %v408_v25 = vand.u32 2147483648, %v396_v19  ;;  %vm402_vm1 = vweird.f32 %v396_v19  ;;  %v406_v26 = vand.u32 2147483647, %v396_v19 }
 0x550   :  { %v409_v28 = vor.u32 1.1754944e-38, %v408_v25  ;;  %vm407_vm3 = vcmp.eq.f32.partialorder %v406_v26, 8.507059e+37 }
 0x552   :  { %433 = vperm.xlu1 %1503, %v431_v16  }
 0x554   :  { %v1531_v20 = vpop.eup %1530 }
 0x555   :  { %v398_v21 = vmul.f32 %v1531_v20, %v396_v19  ;;  %vm403_vm15 = vweird.f32 %v1531_v20 }
 0x556   :  { %vm404_vm2 = vmor %vm402_vm1, %vm403_vm15 }
 0x557   :  { %v399_v22 = vsub.f32 1.0, %v398_v21 }
 0x559   :  { %v400_v23 = vmul.f32 %v1531_v20, %v399_v22 }
 0x55b   :  { %v401_v24 = vadd.f32 %v1531_v20, %v400_v23 }
 0x55d   :  { %v405_v27 = vsel %vm404_vm2, %v1531_v20, %v401_v24 }
 0x55e   :  { %v410_v31 = vsel %vm407_vm3, %v409_v28, %v405_v27  ;;  %vm649_vm3 = vcmp.gt.s32.totalorder %v1955_v34, 5 }
 0x55f   :  { %v413_v35 = vmul.f32 %v410_v31, %v364_v33 }
 0x5bc   :  { %v416_v30 = vpop.permute.xlu1 %415 }
 0x5bd   :  { %v418_v32 = vmul.f32 %v416_v30, %v410_v31 }
 0x5bf   :  { %420 = vrot.lane.b32.xlu2 %v418_v32, %s1799_s4  ;;  %v201_v15 = vpop.f32.mrf.mxu0 }
 0x5c0   :  { %v202_v16 = vadd.f32 %v1944_v8, %v201_v15 }
 0x5c4   :  { %v434_v40 = vpop.permute.xlu1 %433 }
 0x5c5   :  { %vm435_vm4 = vcmp.eq.s32.totalorder %v434_v40, 1 }
 0x619   :  { %v421_v36 = vpop.permute.xlu2 %420 }
 0x61a   :  { %v423_v37 = vadd.f32 %v421_v36, %v413_v35 }
 0x61c   :  { %1532 = vtanh.f32 %v423_v37  ;;  %v437_v3 = vsel %vm435_vm4, %v423_v37, %v364_v33 }
 0x622   :  { %v1533_v38 = vpop.eup %1532 }
 0x623   :  { %426 = vrot.lane.b32.xlu0 %v1533_v38, %s1798_s13 }
 0x695   :  { %v427_v41 = vpop.permute.xlu0 %426 }
 0x696   :  { %v429_v42 = vmul.f32 %v427_v41, %v410_v31 }
 0x698   :  { %v436_v43 = vsel %vm435_vm4, %v429_v42, %v363_v7 }
 0x699   :  { %441 = vrot.lane.b32.xlu2 %v436_v43, %s1799_s4 }
 0x6f3   :  { %v442_v44 = vpop.permute.xlu2 %441 }
 0x6f4   :  { %1449 = vmatmul.msk.f32.vlgmr.msrb.gmra.mxu1 %vm222_vm7, %v442_v44 }
 0x771   :  { %v462_v47 = vpop.f32.mrf.mxu1 }
 0x772   :  { %v465_v48 = vadd.f32 %v462_v47, %v199_v46  ;;  %v138_v46 = vld [vmem:[#allocation4 + $0x28] sm:$0xff] }
 0x773   :  { %1441 = vmatmul.msk.f32.gmra.mxu0 %vm147_vm0, %v138_v46 }
 0x774   :  { %1534 = vtanh.f32 %v465_v48  ;;  %v1450_v50 = vmul.f32 -1.442695, %v465_v48 }
 0x776   :  { %1536 = vpow2.f32 %v1450_v50 }
 0x77a   :  { %v1535_v49 = vpop.eup %1534 }
 0x77b   :  { %488 = vrot.lane.b32.xlu0 %v1535_v49, %s1798_s13 }
 0x77c   :  { %v1537_v51 = vpop.eup %1536 }
 0x77d   :  { %v469_v52 = vadd.f32 1.0, %v1537_v51 }
 0x77f   :  { %1538 = vrcp.f32 %v469_v52  ;;  %v481_v60 = vand.u32 2147483648, %v469_v52  ;;  %vm475_vm9 = vweird.f32 %v469_v52  ;;  %v479_v61 = vand.u32 2147483647, %v469_v52 }
 0x781   :  { %v482_v63 = vor.u32 1.1754944e-38, %v481_v60  ;;  %vm480_vm11 = vcmp.eq.f32.partialorder %v479_v61, 8.507059e+37 }
 0x783   :  { %506 = vperm.xlu0 %1505, %v504_v53   ;;  %v650_v53 = vsel %vm649_vm3, 1, %v1800_v29 }
 0x785   :  { %v1539_v55 = vpop.eup %1538 }
 0x786   :  { %v471_v56 = vmul.f32 %v1539_v55, %v469_v52  ;;  %vm476_vm8 = vweird.f32 %v1539_v55 }
 0x787   :  { %vm477_vm10 = vmor %vm475_vm9, %vm476_vm8 }
 0x788   :  { %v472_v57 = vsub.f32 1.0, %v471_v56 }
 0x78a   :  { %v473_v58 = vmul.f32 %v1539_v55, %v472_v57 }
 0x78b   :  { %579 = vperm.xlu0 %1505, %v577_v54  }
 0x78c   :  { %v474_v59 = vadd.f32 %v1539_v55, %v473_v58 }
 0x78e   :  { %v478_v62 = vsel %vm477_vm10, %v1539_v55, %v474_v59  ;;  %vm722_vm10 = vcmp.gt.s32.totalorder %v1955_v34, 6 }
 0x78f   :  { %v483_v1 = vsel %vm480_vm11, %v482_v63, %v478_v62 }
 0x790   :  { %v486_v4 = vmul.f32 %v483_v1, %v437_v3 }
 0x7ed   :  { %v489_v0 = vpop.permute.xlu0 %488 }
 0x7ee   :  { %v491_v2 = vmul.f32 %v489_v0, %v483_v1 }
 0x7f0   :  { %493 = vrot.lane.b32.xlu1 %v491_v2, %s1799_s4  ;;  %v204_v48 = vpop.f32.mrf.mxu0 }
 0x7f1   :  { %v205_v49 = vadd.f32 %v1944_v8, %v204_v48 }
 0x7f5   :  { %v507_v9 = vpop.permute.xlu0 %506 }
 0x7f6   :  { %vm508_vm12 = vcmp.eq.s32.totalorder %v507_v9, 1 }
 0x7fd   :  { %v580_v42 = vpop.permute.xlu0 %579 }
 0x7fe   :  { %vm581_vm2 = vcmp.eq.s32.totalorder %v580_v42, 1 }
 0x862   :  { %v494_v5 = vpop.permute.xlu1 %493 }
 0x863   :  { %v496_v6 = vadd.f32 %v494_v5, %v486_v4 }
 0x865   :  { %1540 = vtanh.f32 %v496_v6  ;;  %v510_v37 = vsel %vm508_vm12, %v496_v6, %v437_v3 }
 0x86b   :  { %v1541_v7 = vpop.eup %1540 }
 0x86c   :  { %499 = vrot.lane.b32.xlu2 %v1541_v7, %s1798_s13 }
 0x8c6   :  { %v500_v10 = vpop.permute.xlu2 %499 }
 0x8c7   :  { %v502_v11 = vmul.f32 %v500_v10, %v483_v1 }
 0x8c9   :  { %v509_v12 = vsel %vm508_vm12, %v502_v11, %v436_v43  ;;  %v139_v11 = vld [vmem:[#allocation4 + $0x30] sm:$0xff] }
 0x8ca   :  { %514 = vrot.lane.b32.xlu1 %v509_v12, %s1799_s4  ;;  %1442 = vmatmul.msk.f32.gmra.mxu0 %vm147_vm0, %v139_v11  ;;  %v121_v11 = vld [vmem:[#allocation7 + $0x18] sm:$0xff] }
 0x8cb   :  { %823 = vmatpush.msra.mxu3 %v121_v11 }
 0x93c   :  { %v515_v14 = vpop.permute.xlu1 %514 }
 0x93d   :  { %1451 = vmatmul.msk.f32.vlgmr.msrb.gmra.mxu2 %vm222_vm7, %v515_v14 }
 0x9c0   :  { %v535_v17 = vpop.f32.mrf.mxu2 }
 0x9c1   :  { %v538_v18 = vadd.f32 %v535_v17, %v202_v16  ;;  %v207_v17 = vpop.f32.mrf.mxu0 }
 0x9c3   :  { %1542 = vtanh.f32 %v538_v18  ;;  %v1452_v20 = vmul.f32 -1.442695, %v538_v18  ;;  %v208_v18 = vadd.f32 %v1944_v8, %v207_v17 }
 0x9c5   :  { %1544 = vpow2.f32 %v1452_v20 }
 0x9c9   :  { %v1543_v19 = vpop.eup %1542 }
 0x9ca   :  { %561 = vrot.lane.b32.xlu2 %v1543_v19, %s1798_s13 }
 0x9cb   :  { %v1545_v21 = vpop.eup %1544 }
 0x9cc   :  { %v542_v22 = vadd.f32 1.0, %v1545_v21 }
 0x9ce   :  { %1546 = vrcp.f32 %v542_v22  ;;  %v554_v28 = vand.u32 2147483648, %v542_v22  ;;  %vm548_vm14 = vweird.f32 %v542_v22  ;;  %v552_v30 = vand.u32 2147483647, %v542_v22 }
 0x9d0   :  { %v555_v32 = vor.u32 1.1754944e-38, %v554_v28  ;;  %vm553_vm1 = vcmp.eq.f32.partialorder %v552_v30, 8.507059e+37 }
 0x9d4   :  { %v1547_v23 = vpop.eup %1546 }
 0x9d5   :  { %v544_v24 = vmul.f32 %v1547_v23, %v542_v22  ;;  %vm549_vm13 = vweird.f32 %v1547_v23  ;;  %v723_v22 = vsel %vm722_vm10, 1, %v1800_v29 }
 0x9d6   :  { %vm550_vm15 = vmor %vm548_vm14, %vm549_vm13 }
 0x9d7   :  { %v545_v25 = vsub.f32 1.0, %v544_v24 }
 0x9d9   :  { %v546_v26 = vmul.f32 %v1547_v23, %v545_v25 }
 0x9db   :  { %v547_v27 = vadd.f32 %v1547_v23, %v546_v26 }
 0x9dd   :  { %v551_v31 = vsel %vm550_vm15, %v1547_v23, %v547_v27 }
 0x9de   :  { %v556_v35 = vsel %vm553_vm1, %v555_v32, %v551_v31  ;;  %vm795_vm1 = vcmp.gt.s32.totalorder %v1955_v34, 7 }
 0x9df   :  { %v559_v38 = vmul.f32 %v556_v35, %v510_v37 }
 0xa24   :  { %v562_v33 = vpop.permute.xlu2 %561 }
 0xa25   :  { %v564_v36 = vmul.f32 %v562_v33, %v556_v35 }
 0xa27   :  { %566 = vrot.lane.b32.xlu1 %v564_v36, %s1799_s4 }
 0xa99   :  { %v567_v39 = vpop.permute.xlu1 %566 }
 0xa9a   :  { %v569_v40 = vadd.f32 %v567_v39, %v559_v38 }
 0xa9c   :  { %1548 = vtanh.f32 %v569_v40  ;;  %v583_v5 = vsel %vm581_vm2, %v569_v40, %v510_v37 }
 0xaa2   :  { %v1549_v41 = vpop.eup %1548 }
 0xaa3   :  { %572 = vrot.lane.b32.xlu2 %v1549_v41, %s1798_s13 }
 0xafd   :  { %v573_v43 = vpop.permute.xlu2 %572 }
 0xafe   :  { %v575_v44 = vmul.f32 %v573_v43, %v556_v35 }
 0xb00   :  { %v582_v45 = vsel %vm581_vm2, %v575_v44, %v509_v12 }
 0xb01   :  { %587 = vrot.lane.b32.xlu1 %v582_v45, %s1799_s4 }
 0xb73   :  { %v588_v47 = vpop.permute.xlu1 %587 }
 0xb74   :  { %1453 = vmatmul.msk.f32.vlgmr.msrb.gmra.mxu3 %vm222_vm7, %v588_v47 }
 0xbf7   :  { %v608_v50 = vpop.f32.mrf.mxu3 }
 0xbf8   :  { %v611_v51 = vadd.f32 %v608_v50, %v205_v49  ;;  %v140_v49 = vld [vmem:[#allocation4 + $0x38] sm:$0xff] }
 0xbf9   :  { %1443 = vmatmul.msk.f32.gmra.mxu0 %vm147_vm0, %v140_v49  ;;  %v123_v49 = vld [vmem:[#allocation10] sm:$0xff] }
 0xbfa   :  { %1550 = vtanh.f32 %v611_v51  ;;  %v1454_v54 = vmul.f32 -1.442695, %v611_v51 }
 0xbfc   :  { %1552 = vpow2.f32 %v1454_v54 }
 0xc00   :  { %v1551_v52 = vpop.eup %1550 }
 0xc01   :  { %634 = vrot.lane.b32.xlu2 %v1551_v52, %s1798_s13 }
 0xc02   :  { %v1553_v55 = vpop.eup %1552 }
 0xc03   :  { %v615_v56 = vadd.f32 1.0, %v1553_v55 }
 0xc05   :  { %1554 = vrcp.f32 %v615_v56  ;;  %v627_v62 = vand.u32 2147483648, %v615_v56  ;;  %vm621_vm5 = vweird.f32 %v615_v56  ;;  %v625_v63 = vand.u32 2147483647, %v615_v56 }
 0xc07   :  { %v628_v1 = vor.u32 1.1754944e-38, %v627_v62  ;;  %vm626_vm8 = vcmp.eq.f32.partialorder %v625_v63, 8.507059e+37 }
 0xc09   :  { %652 = vperm.xlu2 %1504, %v650_v53  }
 0xc0b   :  { %v1555_v57 = vpop.eup %1554 }
 0xc0c   :  { %v617_v58 = vmul.f32 %v1555_v57, %v615_v56  ;;  %vm622_vm4 = vweird.f32 %v1555_v57  ;;  %v796_v56 = vsel %vm795_vm1, 1, %v1800_v29 }
 0xc0d   :  { %vm623_vm6 = vmor %vm621_vm5, %vm622_vm4 }
 0xc0e   :  { %v618_v59 = vsub.f32 1.0, %v617_v58 }
 0xc10   :  { %v619_v60 = vmul.f32 %v1555_v57, %v618_v59 }
 0xc12   :  { %v620_v61 = vadd.f32 %v1555_v57, %v619_v60 }
 0xc14   :  { %v624_v0 = vsel %vm623_vm6, %v1555_v57, %v620_v61 }
 0xc15   :  { %v629_v3 = vsel %vm626_vm8, %v628_v1, %v624_v0 }
 0xc16   :  { %v632_v6 = vmul.f32 %v629_v3, %v583_v5 }
 0xc5b   :  { %v635_v2 = vpop.permute.xlu2 %634 }
 0xc5c   :  { %v637_v4 = vmul.f32 %v635_v2, %v629_v3 }
 0xc5e   :  { %639 = vrot.lane.b32.xlu0 %v637_v4, %s1799_s4 }
 0xc63   :  { %v653_v12 = vpop.permute.xlu2 %652 }
 0xc64   :  { %vm654_vm9 = vcmp.eq.s32.totalorder %v653_v12, 1  ;;  %v120_v12 = vld [vmem:[#allocation7 + $0x10] sm:$0xff] }
 0xc65   :  { %824 = vmatpush.msra.mxu3 %v120_v12 }
 0xc76   :  { %v210_v51 = vpop.f32.mrf.mxu0 }
 0xc77   :  { %v211_v52 = vadd.f32 %v1944_v8, %v210_v51 }
 0xcd0   :  { %v640_v7 = vpop.permute.xlu0 %639 }
 0xcd1   :  { %v642_v9 = vadd.f32 %v640_v7, %v632_v6 }
 0xcd3   :  { %1556 = vtanh.f32 %v642_v9  ;;  %v656_v40 = vsel %vm654_vm9, %v642_v9, %v583_v5 }
 0xcd9   :  { %v1557_v10 = vpop.eup %1556 }
 0xcda   :  { %645 = vrot.lane.b32.xlu1 %v1557_v10, %s1798_s13 }
 0xd4c   :  { %v646_v13 = vpop.permute.xlu1 %645 }
 0xd4d   :  { %v648_v14 = vmul.f32 %v646_v13, %v629_v3  ;;  %v119_v13 = vld [vmem:[#allocation7 + $0x8] sm:$0xff] }
 0xd4e   :  { %825 = vmatpush.msra.mxu3 %v119_v13 }
 0xd4f   :  { %v655_v15 = vsel %vm654_vm9, %v648_v14, %v582_v45  ;;  %v118_v14 = vld [vmem:[#allocation7] sm:$0xff] }
 0xd50   :  { %660 = vrot.lane.b32.xlu0 %v655_v15, %s1799_s4  ;;  %826 = vmatpush.msra.mxu3 %v118_v14 }
 0xdc2   :  { %v661_v16 = vpop.permute.xlu0 %660 }
 0xdc3   :  { %1455 = vmatmul.msk.f32.vlgmr.msra.gmra.mxu1 %vm222_vm7, %v661_v16 }
 0xe40   :  { %v681_v19 = vpop.f32.mrf.mxu1 }
 0xe41   :  { %v684_v20 = vadd.f32 %v681_v19, %v208_v18 }
 0xe43   :  { %1558 = vtanh.f32 %v684_v20  ;;  %v1456_v23 = vmul.f32 -1.442695, %v684_v20  ;;  %v1507_v20 = vld [vmem:[#allocation9] ss:$0 sm:$0xff] }
 0xe45   :  { %1560 = vpow2.f32 %v1456_v23 }
 0xe49   :  { %v1559_v21 = vpop.eup %1558 }
 0xe4a   :  { %707 = vrot.lane.b32.xlu1 %v1559_v21, %s1798_s13 }
 0xe4b   :  { %v1561_v24 = vpop.eup %1560 }
 0xe4c   :  { %v688_v25 = vadd.f32 1.0, %v1561_v24 }
 0xe4e   :  { %1562 = vrcp.f32 %v688_v25  ;;  %v700_v32 = vand.u32 2147483648, %v688_v25  ;;  %vm694_vm12 = vweird.f32 %v688_v25  ;;  %v698_v33 = vand.u32 2147483647, %v688_v25 }
 0xe50   :  { %v701_v36 = vor.u32 1.1754944e-38, %v700_v32  ;;  %vm699_vm14 = vcmp.eq.f32.partialorder %v698_v33, 8.507059e+37 }
 0xe52   :  { %725 = vperm.xlu1 %1503, %v723_v22  }
 0xe54   :  { %v1563_v26 = vpop.eup %1562 }
 0xe55   :  { %v690_v27 = vmul.f32 %v1563_v26, %v688_v25  ;;  %vm695_vm11 = vweird.f32 %v1563_v26 }
 0xe56   :  { %vm696_vm13 = vmor %vm694_vm12, %vm695_vm11 }
 0xe57   :  { %v691_v28 = vsub.f32 1.0, %v690_v27 }
 0xe59   :  { %v692_v30 = vmul.f32 %v1563_v26, %v691_v28 }
 0xe5b   :  { %v693_v31 = vadd.f32 %v1563_v26, %v692_v30 }
 0xe5d   :  { %v697_v35 = vsel %vm696_vm13, %v1563_v26, %v693_v31 }
 0xe5e   :  { %v702_v38 = vsel %vm699_vm14, %v701_v36, %v697_v35 }
 0xe5f   :  { %v705_v41 = vmul.f32 %v702_v38, %v656_v40 }
 0xebc   :  { %v708_v37 = vpop.permute.xlu1 %707 }
 0xebd   :  { %v710_v39 = vmul.f32 %v708_v37, %v702_v38 }
 0xebf   :  { %712 = vrot.lane.b32.xlu2 %v710_v39, %s1799_s4 }
 0xec4   :  { %v726_v45 = vpop.permute.xlu1 %725 }
 0xec5   :  { %vm727_vm15 = vcmp.eq.s32.totalorder %v726_v45, 1 }
 0xf19   :  { %v713_v42 = vpop.permute.xlu2 %712 }
 0xf1a   :  { %v715_v43 = vadd.f32 %v713_v42, %v705_v41 }
 0xf1c   :  { %1564 = vtanh.f32 %v715_v43  ;;  %v729_v5 = vsel %vm727_vm15, %v715_v43, %v656_v40 }
 0xf22   :  { %v1565_v44 = vpop.eup %1564 }
 0xf23   :  { %718 = vrot.lane.b32.xlu0 %v1565_v44, %s1798_s13 }
 0xf95   :  { %v719_v46 = vpop.permute.xlu0 %718 }
 0xf96   :  { %v721_v47 = vmul.f32 %v719_v46, %v702_v38  ;;  %v126_v46 = vld [vmem:[#allocation10 + $0x18] sm:$0xff] }
 0xf97   :  { %890 = vmatpush.msrb.mxu1 %v126_v46  ;;  %955 = vmatpush.msrb.mxu2 %v126_v46 }
 0xf98   :  { %v728_v48 = vsel %vm727_vm15, %v721_v47, %v655_v15  ;;  %v125_v47 = vld [vmem:[#allocation10 + $0x10] sm:$0xff]  ;;  %1020 = vmatpush.msrb.mxu3 %v126_v46 }
 0xf99   :  { %733 = vrot.lane.b32.xlu2 %v728_v48, %s1799_s4  ;;  %891 = vmatpush.msrb.mxu1 %v125_v47 }
 0xf9a   :  { %956 = vmatpush.msrb.mxu2 %v125_v47  ;;  %1021 = vmatpush.msrb.mxu3 %v125_v47 }
 0xff3   :  { %v734_v50 = vpop.permute.xlu2 %733 }
 0xff4   :  { %1457 = vmatmul.msk.f32.vlgmr.msra.gmra.mxu2 %vm222_vm7, %v734_v50 }
0x1077   :  { %v754_v53 = vpop.f32.mrf.mxu2 }
0x1078   :  { %v757_v54 = vadd.f32 %v754_v53, %v211_v52  ;;  %v2054_v53 = vld [vmem:[#allocation12] ss:$0 sm:$0xff] }
0x107a   :  { %1566 = vtanh.f32 %v757_v54  ;;  %v1458_v57 = vmul.f32 -1.442695, %v757_v54 }
0x107c   :  { %1568 = vpow2.f32 %v1458_v57 }
0x1080   :  { %v1567_v55 = vpop.eup %1566 }
0x1081   :  { %780 = vrot.lane.b32.xlu0 %v1567_v55, %s1798_s13 }
0x1082   :  { %v1569_v58 = vpop.eup %1568 }
0x1083   :  { %v761_v59 = vadd.f32 1.0, %v1569_v58 }
0x1085   :  { %1570 = vrcp.f32 %v761_v59  ;;  %v773_v0 = vand.u32 2147483648, %v761_v59  ;;  %vm767_vm3 = vweird.f32 %v761_v59  ;;  %v771_v1 = vand.u32 2147483647, %v761_v59 }
0x1087   :  { %v774_v34 = vor.u32 1.1754944e-38, %v773_v0  ;;  %vm772_vm5 = vcmp.eq.f32.partialorder %v771_v1, 8.507059e+37 }
0x1089   :  { %798 = vperm.xlu0 %1505, %v796_v56  }
0x108b   :  { %v1571_v60 = vpop.eup %1570 }
0x108c   :  { %v763_v61 = vmul.f32 %v1571_v60, %v761_v59  ;;  %vm768_vm2 = vweird.f32 %v1571_v60 }
0x108d   :  { %vm769_vm4 = vmor %vm767_vm3, %vm768_vm2 }
0x108e   :  { %v764_v62 = vsub.f32 1.0, %v763_v61 }
0x1090   :  { %v765_v8 = vmul.f32 %v1571_v60, %v764_v62 }
0x1092   :  { %v766_v63 = vadd.f32 %v1571_v60, %v765_v8 }
0x1094   :  { %v770_v2 = vsel %vm769_vm4, %v1571_v60, %v766_v63 }
0x1095   :  { %v775_v3 = vsel %vm772_vm5, %v774_v34, %v770_v2 }
0x1096   :  { %v778_v6 = vmul.f32 %v775_v3, %v729_v5 }
0x10f3   :  { %v781_v29 = vpop.permute.xlu0 %780 }
0x10f4   :  { %v783_v4 = vmul.f32 %v781_v29, %v775_v3 }
0x10f6   :  { %785 = vrot.lane.b32.xlu1 %v783_v4, %s1799_s4 }
0x10fb   :  { %v799_v15 = vpop.permute.xlu0 %798 }
0x10fc   :  { %vm800_vm6 = vcmp.eq.s32.totalorder %v799_v15, 1 }
0x1168   :  { %v786_v7 = vpop.permute.xlu1 %785 }
0x1169   :  { %v788_v9 = vadd.f32 %v786_v7, %v778_v6 }
0x116b   :  { %1572 = vtanh.f32 %v788_v9  ;;  %v802_v41 = vsel %vm800_vm6, %v788_v9, %v729_v5 }
0x1171   :  { %v1573_v10 = vpop.eup %1572 }
0x1172   :  { %791 = vrot.lane.b32.xlu2 %v1573_v10, %s1798_s13 }
0x11cc   :  { %v792_v16 = vpop.permute.xlu2 %791 }
0x11cd   :  { %v794_v17 = vmul.f32 %v792_v16, %v775_v3 }
0x11cf   :  { %v801_v18 = vsel %vm800_vm6, %v794_v17, %v728_v48  ;;  %v124_v48 = vld [vmem:[#allocation10 + $0x8] sm:$0xff] }
0x11d0   :  { %807 = vrot.lane.b32.xlu1 %v801_v18, %s1799_s4  ;;  %892 = vmatpush.msrb.mxu1 %v124_v48 }
0x11d1   :  { %957 = vmatpush.msrb.mxu2 %v124_v48  ;;  %1022 = vmatpush.msrb.mxu3 %v124_v48 }
0x11d2   :  { %893 = vmatpush.msrb.mxu1 %v123_v49 }
0x11d3   :  { %958 = vmatpush.msrb.mxu2 %v123_v49  ;;  %1023 = vmatpush.msrb.mxu3 %v123_v49 }
0x11d4   :  { %1085 = vmatpush.msra.mxu1 %v126_v46 }
0x11d5   :  { %1150 = vmatpush.msra.mxu2 %v126_v46 }
0x11d6   :  { %1086 = vmatpush.msra.mxu1 %v125_v47 }
0x11d7   :  { %1151 = vmatpush.msra.mxu2 %v125_v47 }
0x11d8   :  { %1087 = vmatpush.msra.mxu1 %v124_v48 }
0x11d9   :  { %1152 = vmatpush.msra.mxu2 %v124_v48 }
0x11da   :  { %1088 = vmatpush.msra.mxu1 %v123_v49 }
0x11db   :  { %1153 = vmatpush.msra.mxu2 %v123_v49 }
0x1242   :  { %v808_v19 = vpop.permute.xlu1 %807 }
0x1243   :  { %1459 = vmatmul.msk.f32.vlgmr.msra.gmra.mxu3 %vm222_vm7, %v808_v19 }
0x1244   :  { %1215 = vmatpush.msra.mxu3 %v126_v46 }
0x1246   :  { %1216 = vmatpush.msra.mxu3 %v125_v47 }
0x1248   :  { %1217 = vmatpush.msra.mxu3 %v124_v48 }
0x124a   :  { %1218 = vmatpush.msra.mxu3 %v123_v49 }
0x12c6   :  { %v828_v21 = vpop.f32.mrf.mxu3 }
0x12c7   :  { %v829_v22 = vadd.f32 %v1507_v20, %v828_v21 }
0x12c9   :  { %1574 = vtanh.f32 %v829_v22  ;;  %v1460_v24 = vmul.f32 -1.442695, %v829_v22 }
0x12cb   :  { %1576 = vpow2.f32 %v1460_v24 }
0x12cf   :  { %v1575_v23 = vpop.eup %1574 }
0x12d0   :  { %853 = vrot.lane.b32.xlu2 %v1575_v23, %s1798_s13 }
0x12d1   :  { %v1577_v25 = vpop.eup %1576 }
0x12d2   :  { %v834_v26 = vadd.f32 1.0, %v1577_v25 }
0x12d4   :  { %1578 = vrcp.f32 %v834_v26  ;;  %v846_v33 = vand.u32 2147483648, %v834_v26  ;;  %vm840_vm9 = vweird.f32 %v834_v26  ;;  %v844_v35 = vand.u32 2147483647, %v834_v26 }
0x12d6   :  { %v847_v37 = vor.u32 1.1754944e-38, %v846_v33  ;;  %vm845_vm11 = vcmp.eq.f32.partialorder %v844_v35, 8.507059e+37 }
0x12da   :  { %v1579_v27 = vpop.eup %1578 }
0x12db   :  { %v836_v28 = vmul.f32 %v1579_v27, %v834_v26  ;;  %vm841_vm8 = vweird.f32 %v1579_v27 }
0x12dc   :  { %vm842_vm10 = vmor %vm840_vm9, %vm841_vm8 }
0x12dd   :  { %v837_v30 = vsub.f32 1.0, %v836_v28 }
0x12df   :  { %v838_v31 = vmul.f32 %v1579_v27, %v837_v30 }
0x12e1   :  { %v839_v32 = vadd.f32 %v1579_v27, %v838_v31 }
0x12e3   :  { %v843_v36 = vsel %vm842_vm10, %v1579_v27, %v839_v32 }
0x12e4   :  { %v848_v39 = vsel %vm845_vm11, %v847_v37, %v843_v36 }
0x12e5   :  { %v851_v42 = vmul.f32 %v848_v39, %v802_v41 }
0x132a   :  { %v854_v38 = vpop.permute.xlu2 %853 }
0x132b   :  { %v856_v40 = vmul.f32 %v854_v38, %v848_v39 }
0x132d   :  { %858 = vrot.lane.b32.xlu0 %v856_v40, %s1799_s4 }
0x139f   :  { %v859_v43 = vpop.permute.xlu0 %858 }
0x13a0   :  { %v2047_v44 = vadd.f32 %v859_v43, %v851_v42 }
0x13a2   :  { %1580 = vtanh.f32 %v2047_v44 }
0x13a8   :  { %v1581_v45 = vpop.eup %1580 }
0x13a9   :  { %864 = vrot.lane.b32.xlu1 %v1581_v45, %s1798_s13 }
0x141b   :  { %v865_v50 = vpop.permute.xlu1 %864 }
0x141c   :  { %v867_v51 = vmul.f32 %v865_v50, %v848_v39 }
0x141e   :  { %869 = vrot.lane.b32.xlu2 %v867_v51, %s1799_s4 }
0x1478   :  { %v870_v52 = vpop.permute.xlu2 %869 }
0x1479   :  { %872 = vst.msk [vmem:[#allocation3] sm:$0xff] %vm222_vm7, %v870_v52  ;;  %1461 = vmatmul.msk.f32.vlgmr.msrb.gmra.mxu1 %vm222_vm7, %v870_v52 }
0x147a   :  { %1280 = vmatpush.msrb.mxu1 %v126_v46 }
0x147c   :  { %1281 = vmatpush.msrb.mxu1 %v125_v47 }
0x147e   :  { %1282 = vmatpush.msrb.mxu1 %v124_v48 }
0x1480   :  { %1283 = vmatpush.msrb.mxu1 %v123_v49 }
0x14f6   :  { %v895_v54 = vpop.f32.mrf.mxu1 }
0x14f7   :  { %v896_v55 = vadd.f32 %v2054_v53, %v895_v54 }
0x14f9   :  { %1582 = vtanh.f32 %v896_v55  ;;  %v1462_v57 = vmul.f32 -1.442695, %v896_v55 }
0x14fb   :  { %1584 = vpow2.f32 %v1462_v57 }
0x14ff   :  { %v1583_v56 = vpop.eup %1582 }
0x1500   :  { %920 = vrot.lane.b32.xlu0 %v1583_v56, %s1798_s13 }
0x1501   :  { %v1585_v58 = vpop.eup %1584 }
0x1502   :  { %v901_v59 = vadd.f32 1.0, %v1585_v58 }
0x1504   :  { %1586 = vrcp.f32 %v901_v59  ;;  %v913_v0 = vand.u32 2147483648, %v901_v59  ;;  %vm907_vm13 = vweird.f32 %v901_v59  ;;  %v911_v1 = vand.u32 2147483647, %v901_v59 }
0x1506   :  { %v914_v34 = vor.u32 1.1754944e-38, %v913_v0  ;;  %vm912_vm15 = vcmp.eq.f32.partialorder %v911_v1, 8.507059e+37 }
0x150a   :  { %v1587_v60 = vpop.eup %1586 }
0x150b   :  { %v903_v61 = vmul.f32 %v1587_v60, %v901_v59  ;;  %vm908_vm12 = vweird.f32 %v1587_v60 }
0x150c   :  { %vm909_vm14 = vmor %vm907_vm13, %vm908_vm12 }
0x150d   :  { %v904_v62 = vsub.f32 1.0, %v903_v61 }
0x150f   :  { %v905_v8 = vmul.f32 %v1587_v60, %v904_v62 }
0x1511   :  { %v906_v63 = vadd.f32 %v1587_v60, %v905_v8 }
0x1513   :  { %v910_v2 = vsel %vm909_vm14, %v1587_v60, %v906_v63 }
0x1514   :  { %v915_v3 = vsel %vm912_vm15, %v914_v34, %v910_v2 }
0x1515   :  { %v918_v5 = vmul.f32 %v915_v3, %v2047_v44 }
0x1572   :  { %v921_v29 = vpop.permute.xlu0 %920 }
0x1573   :  { %v923_v4 = vmul.f32 %v921_v29, %v915_v3 }
0x1575   :  { %925 = vrot.lane.b32.xlu1 %v923_v4, %s1799_s4 }
0x15e7   :  { %v926_v6 = vpop.permute.xlu1 %925 }
0x15e8   :  { %v928_v7 = vadd.f32 %v926_v6, %v918_v5 }
0x15ea   :  { %1588 = vtanh.f32 %v928_v7 }
0x15f0   :  { %v1589_v9 = vpop.eup %1588 }
0x15f1   :  { %931 = vrot.lane.b32.xlu2 %v1589_v9, %s1798_s13 }
0x164b   :  { %v932_v10 = vpop.permute.xlu2 %931 }
0x164c   :  { %v934_v11 = vmul.f32 %v932_v10, %v915_v3 }
0x164e   :  { %936 = vrot.lane.b32.xlu0 %v934_v11, %s1799_s4 }
0x16c0   :  { %v937_v12 = vpop.permute.xlu0 %936 }
0x16c1   :  { %940 = vst.msk [vmem:[#allocation3 + $0x8] sm:$0xff] %vm222_vm7, %v937_v12  ;;  %1463 = vmatmul.msk.f32.vlgmr.msrb.gmra.mxu2 %vm222_vm7, %v937_v12 }
0x1744   :  { %v960_v13 = vpop.f32.mrf.mxu2 }
0x1745   :  { %v961_v14 = vadd.f32 %v2054_v53, %v960_v13 }
0x1747   :  { %1590 = vtanh.f32 %v961_v14  ;;  %v1464_v16 = vmul.f32 -1.442695, %v961_v14 }
0x1749   :  { %1592 = vpow2.f32 %v1464_v16 }
0x174d   :  { %v1591_v15 = vpop.eup %1590 }
0x174e   :  { %985 = vrot.lane.b32.xlu1 %v1591_v15, %s1798_s13 }
0x174f   :  { %v1593_v17 = vpop.eup %1592 }
0x1750   :  { %v966_v18 = vadd.f32 1.0, %v1593_v17 }
0x1752   :  { %1594 = vrcp.f32 %v966_v18  ;;  %v978_v24 = vand.u32 2147483648, %v966_v18  ;;  %vm972_vm2 = vweird.f32 %v966_v18  ;;  %v976_v25 = vand.u32 2147483647, %v966_v18 }
0x1754   :  { %v979_v27 = vor.u32 1.1754944e-38, %v978_v24  ;;  %vm977_vm4 = vcmp.eq.f32.partialorder %v976_v25, 8.507059e+37  ;;  %v131_v24 = vld [vmem:[%s2165_s9 + $0x18] sm:$0xff]  ;;  %v130_v25 = vld [vmem:[%s2165_s9 + $0x10] sm:$0xff] }
0x1755   :  { %1483 = vmatpush.msrb.mxu2 %v131_v24 }
0x1757   :  { %1485 = vmatpush.msrb.mxu2 %v130_v25 }
0x1758   :  { %v1595_v19 = vpop.eup %1594 }
0x1759   :  { %v968_v20 = vmul.f32 %v1595_v19, %v966_v18  ;;  %vm973_vm1 = vweird.f32 %v1595_v19 }
0x175a   :  { %vm974_vm3 = vmor %vm972_vm2, %vm973_vm1 }
0x175b   :  { %v969_v21 = vsub.f32 1.0, %v968_v20 }
0x175d   :  { %v970_v22 = vmul.f32 %v1595_v19, %v969_v21 }
0x175f   :  { %v971_v23 = vadd.f32 %v1595_v19, %v970_v22 }
0x1761   :  { %v975_v26 = vsel %vm974_vm3, %v1595_v19, %v971_v23 }
0x1762   :  { %v980_v30 = vsel %vm977_vm4, %v979_v27, %v975_v26  ;;  %v129_v26 = vld [vmem:[%s2165_s9 + $0x8] sm:$0xff]  ;;  %v128_v27 = vld [vmem:[%s2165_s9] sm:$0xff] }
0x1763   :  { %v983_v32 = vmul.f32 %v980_v30, %v928_v7  ;;  %1487 = vmatpush.msrb.mxu2 %v129_v26 }
0x1765   :  { %1489 = vmatpush.msrb.mxu2 %v128_v27 }
0x17c0   :  { %v986_v28 = vpop.permute.xlu1 %985 }
0x17c1   :  { %v988_v31 = vmul.f32 %v986_v28, %v980_v30 }
0x17c3   :  { %990 = vrot.lane.b32.xlu2 %v988_v31, %s1799_s4 }
0x181d   :  { %v991_v33 = vpop.permute.xlu2 %990 }
0x181e   :  { %v993_v35 = vadd.f32 %v991_v33, %v983_v32 }
0x1820   :  { %1596 = vtanh.f32 %v993_v35 }
0x1826   :  { %v1597_v36 = vpop.eup %1596 }
0x1827   :  { %996 = vrot.lane.b32.xlu0 %v1597_v36, %s1798_s13  ;;  %v2107_v36 = vld [vmem:[%s2166_s10] ss:$0 sm:$0xff]  ;;  %s1801_s10 = smov [#allocation13]  }
0x1828   :  { %s1419_s22 = sshll.u32 %s1801_s10, 4  ;;  %s1420_s22 = int_to_ptr.vmem [resolvable:$true] %s1419_s22 }
0x1899   :  { %v997_v37 = vpop.permute.xlu0 %996 }
0x189a   :  { %v999_v38 = vmul.f32 %v997_v37, %v980_v30 }
0x189c   :  { %1001 = vrot.lane.b32.xlu1 %v999_v38, %s1799_s4 }
0x190e   :  { %v1002_v39 = vpop.permute.xlu1 %1001 }
0x190f   :  { %1005 = vst.msk [vmem:[#allocation3 + $0x10] sm:$0xff] %vm222_vm7, %v1002_v39  ;;  %1465 = vmatmul.msk.f32.vlgmr.msrb.gmra.mxu3 %vm222_vm7, %v1002_v39 }
0x1910   :  { %1484 = vmatpush.msrb.mxu3 %v131_v24 }
0x1912   :  { %1486 = vmatpush.msrb.mxu3 %v130_v25 }
0x1914   :  { %1488 = vmatpush.msrb.mxu3 %v129_v26 }
0x1916   :  { %1490 = vmatpush.msrb.mxu3 %v128_v27  ;;  %v1333_v30 = vld [vmem:[#allocation3 + $0x10] sm:$0xff] }
0x1992   :  { %v1025_v40 = vpop.f32.mrf.mxu3 }
0x1993   :  { %v1026_v41 = vadd.f32 %v2054_v53, %v1025_v40 }
0x1995   :  { %1598 = vtanh.f32 %v1026_v41  ;;  %v1466_v43 = vmul.f32 -1.442695, %v1026_v41 }
0x1997   :  { %1600 = vpow2.f32 %v1466_v43 }
0x199b   :  { %v1599_v42 = vpop.eup %1598 }
0x199c   :  { %1050 = vrot.lane.b32.xlu2 %v1599_v42, %s1798_s13 }
0x199d   :  { %v1601_v44 = vpop.eup %1600 }
0x199e   :  { %v1031_v45 = vadd.f32 1.0, %v1601_v44 }
0x19a0   :  { %1602 = vrcp.f32 %v1031_v45  ;;  %v1043_v51 = vand.u32 2147483648, %v1031_v45  ;;  %vm1037_vm6 = vweird.f32 %v1031_v45  ;;  %v1041_v52 = vand.u32 2147483647, %v1031_v45 }
0x19a2   :  { %v1044_v55 = vor.u32 1.1754944e-38, %v1043_v51  ;;  %vm1042_vm9 = vcmp.eq.f32.partialorder %v1041_v52, 8.507059e+37 }
0x19a6   :  { %v1603_v46 = vpop.eup %1602 }
0x19a7   :  { %v1033_v47 = vmul.f32 %v1603_v46, %v1031_v45  ;;  %vm1038_vm5 = vweird.f32 %v1603_v46 }
0x19a8   :  { %vm1039_vm8 = vmor %vm1037_vm6, %vm1038_vm5 }
0x19a9   :  { %v1034_v48 = vsub.f32 1.0, %v1033_v47 }
0x19ab   :  { %v1035_v49 = vmul.f32 %v1603_v46, %v1034_v48 }
0x19ad   :  { %v1036_v50 = vadd.f32 %v1603_v46, %v1035_v49 }
0x19af   :  { %v1040_v54 = vsel %vm1039_vm8, %v1603_v46, %v1036_v50 }
0x19b0   :  { %v1045_v57 = vsel %vm1042_vm9, %v1044_v55, %v1040_v54 }
0x19b1   :  { %v1048_v59 = vmul.f32 %v1045_v57, %v993_v35 }
0x19f6   :  { %v1051_v56 = vpop.permute.xlu2 %1050 }
0x19f7   :  { %v1053_v58 = vmul.f32 %v1051_v56, %v1045_v57 }
0x19f9   :  { %1055 = vrot.lane.b32.xlu0 %v1053_v58, %s1799_s4 }
0x1a6b   :  { %v1056_v60 = vpop.permute.xlu0 %1055 }
0x1a6c   :  { %v1058_v61 = vadd.f32 %v1056_v60, %v1048_v59 }
0x1a6e   :  { %1604 = vtanh.f32 %v1058_v61 }
0x1a74   :  { %v1605_v62 = vpop.eup %1604 }
0x1a75   :  { %1061 = vrot.lane.b32.xlu1 %v1605_v62, %s1798_s13 }
0x1ae7   :  { %v1062_v8 = vpop.permute.xlu1 %1061 }
0x1ae8   :  { %v1064_v63 = vmul.f32 %v1062_v8, %v1045_v57 }
0x1aea   :  { %1066 = vrot.lane.b32.xlu2 %v1064_v63, %s1799_s4 }
0x1b44   :  { %v1067_v0 = vpop.permute.xlu2 %1066 }
0x1b45   :  { %1070 = vst.msk [vmem:[#allocation3 + $0x18] sm:$0xff] %vm222_vm7, %v1067_v0  ;;  %1467 = vmatmul.msk.f32.vlgmr.msra.gmra.mxu1 %vm222_vm7, %v1067_v0 }
0x1b46   :  { %1378 = vmatpush.msra.mxu1 %v131_v24 }
0x1b48   :  { %1379 = vmatpush.msra.mxu1 %v130_v25 }
0x1b4a   :  { %1380 = vmatpush.msra.mxu1 %v129_v26 }
0x1b4c   :  { %1381 = vmatpush.msra.mxu1 %v128_v27  ;;  %v1334_v31 = vld [vmem:[#allocation3 + $0x18] sm:$0xff] }
0x1bc2   :  { %v1090_v1 = vpop.f32.mrf.mxu1 }
0x1bc3   :  { %v1091_v2 = vadd.f32 %v2054_v53, %v1090_v1 }
0x1bc5   :  { %1606 = vtanh.f32 %v1091_v2  ;;  %v1468_v29 = vmul.f32 -1.442695, %v1091_v2 }
0x1bc7   :  { %1608 = vpow2.f32 %v1468_v29 }
0x1bcb   :  { %v1607_v34 = vpop.eup %1606 }
0x1bcc   :  { %1115 = vrot.lane.b32.xlu0 %v1607_v34, %s1798_s13 }
0x1bcd   :  { %v1609_v3 = vpop.eup %1608 }
0x1bce   :  { %v1096_v4 = vadd.f32 1.0, %v1609_v3 }
0x1bd0   :  { %1610 = vrcp.f32 %v1096_v4  ;;  %v1108_v11 = vand.u32 2147483648, %v1096_v4  ;;  %vm1102_vm11 = vweird.f32 %v1096_v4  ;;  %v1106_v12 = vand.u32 2147483647, %v1096_v4 }
0x1bd2   :  { %v1109_v14 = vor.u32 1.1754944e-38, %v1108_v11  ;;  %vm1107_vm13 = vcmp.eq.f32.partialorder %v1106_v12, 8.507059e+37 }
0x1bd6   :  { %v1611_v5 = vpop.eup %1610 }
0x1bd7   :  { %v1098_v6 = vmul.f32 %v1611_v5, %v1096_v4  ;;  %vm1103_vm10 = vweird.f32 %v1611_v5 }
0x1bd8   :  { %vm1104_vm12 = vmor %vm1102_vm11, %vm1103_vm10 }
0x1bd9   :  { %v1099_v7 = vsub.f32 1.0, %v1098_v6 }
0x1bdb   :  { %v1100_v9 = vmul.f32 %v1611_v5, %v1099_v7 }
0x1bdd   :  { %v1101_v10 = vadd.f32 %v1611_v5, %v1100_v9 }
0x1bdf   :  { %v1105_v13 = vsel %vm1104_vm12, %v1611_v5, %v1101_v10 }
0x1be0   :  { %v1110_v16 = vsel %vm1107_vm13, %v1109_v14, %v1105_v13 }
0x1be1   :  { %v1113_v18 = vmul.f32 %v1110_v16, %v1058_v61 }
0x1c3e   :  { %v1116_v15 = vpop.permute.xlu0 %1115 }
0x1c3f   :  { %v1118_v17 = vmul.f32 %v1116_v15, %v1110_v16 }
0x1c41   :  { %1120 = vrot.lane.b32.xlu1 %v1118_v17, %s1799_s4 }
0x1cb3   :  { %v1121_v19 = vpop.permute.xlu1 %1120 }
0x1cb4   :  { %v2081_v20 = vadd.f32 %v1121_v19, %v1113_v18 }
0x1cb6   :  { %1612 = vtanh.f32 %v2081_v20 }
0x1cbc   :  { %v1613_v21 = vpop.eup %1612 }
0x1cbd   :  { %1126 = vrot.lane.b32.xlu2 %v1613_v21, %s1798_s13 }
0x1d17   :  { %v1127_v22 = vpop.permute.xlu2 %1126 }
0x1d18   :  { %v1129_v23 = vmul.f32 %v1127_v22, %v1110_v16 }
0x1d1a   :  { %1131 = vrot.lane.b32.xlu0 %v1129_v23, %s1799_s4 }
0x1d8c   :  { %v1132_v28 = vpop.permute.xlu0 %1131 }
0x1d8d   :  { %1135 = vst.msk [vmem:[#allocation3 + $0x20] sm:$0xff] %vm222_vm7, %v1132_v28  ;;  %1469 = vmatmul.msk.f32.vlgmr.msra.gmra.mxu2 %vm222_vm7, %v1132_v28 }
0x1d94   :  { %v1335_v32 = vld [vmem:[#allocation3 + $0x20] sm:$0xff] }
0x1d95   :  { %1477 = vmatmul.msk.f32.vlgmr.msrb.gmra.mxu2 %vm222_vm7, %v1333_v30  ;;  %v1331_v30 = vld [vmem:[#allocation3] sm:$0xff] }
0x1d9d   :  { %1478 = vmatmul.msk.f32.gmra.mxu2 %vm222_vm7, %v1334_v31 }
0x1da5   :  { %1479 = vmatmul.msk.f32.gmra.mxu2 %vm222_vm7, %v1335_v32  ;;  %v1332_v32 = vld [vmem:[#allocation3 + $0x8] sm:$0xff] }
0x1e10   :  { %v1155_v33 = vpop.f32.mrf.mxu2 }
0x1e11   :  { %v1156_v35 = vadd.f32 %v2054_v53, %v1155_v33 }
0x1e13   :  { %1614 = vtanh.f32 %v1156_v35  ;;  %v1470_v44 = vmul.f32 -1.442695, %v1156_v35 }
0x1e15   :  { %1616 = vpow2.f32 %v1470_v44 }
0x1e18   :  { %v1389_v37 = vpop.f32.mrf.mxu2 }
0x1e19   :  { %v1615_v38 = vpop.eup %1614  ;;  %v1390_v39 = vadd.f32 %v2107_v36, %v1389_v37 }
0x1e1a   :  { %1180 = vrot.lane.b32.xlu1 %v1615_v38, %s1798_s13 }
0x1e1b   :  { %1409 = vst.msk [vmem:[#allocation13 + $0x10] sm:$0xff] %vm147_vm0, %v1390_v39  ;;  %v1617_v45 = vpop.eup %1616 }
0x1e1c   :  { %v1161_v46 = vadd.f32 1.0, %v1617_v45 }
0x1e1e   :  { %1618 = vrcp.f32 %v1161_v46  ;;  %v1173_v52 = vand.u32 2147483648, %v1161_v46  ;;  %vm1167_vm15 = vweird.f32 %v1161_v46  ;;  %v1171_v54 = vand.u32 2147483647, %v1161_v46 }
0x1e20   :  { %v1392_v40 = vpop.f32.mrf.mxu2  ;;  %v1174_v56 = vor.u32 1.1754944e-38, %v1173_v52  ;;  %vm1172_vm2 = vcmp.eq.f32.partialorder %v1171_v54, 8.507059e+37 }
0x1e21   :  { %v1393_v41 = vadd.f32 %v2107_v36, %v1392_v40 }
0x1e23   :  { %1410 = vst.msk [vmem:[#allocation13 + $0x18] sm:$0xff] %vm147_vm0, %v1393_v41 }
0x1e24   :  { %v1619_v47 = vpop.eup %1618 }
0x1e25   :  { %v1163_v48 = vmul.f32 %v1619_v47, %v1161_v46  ;;  %vm1168_vm14 = vweird.f32 %v1619_v47 }
0x1e26   :  { %vm1169_vm1 = vmor %vm1167_vm15, %vm1168_vm14 }
0x1e27   :  { %v1164_v49 = vsub.f32 1.0, %v1163_v48 }
0x1e28   :  { %v1395_v42 = vpop.f32.mrf.mxu2 }
0x1e29   :  { %v1396_v43 = vadd.f32 %v2107_v36, %v1395_v42  ;;  %v1165_v50 = vmul.f32 %v1619_v47, %v1164_v49 }
0x1e2b   :  { %1411 = vst.msk [vmem:[#allocation13 + $0x20] sm:$0xff] %vm147_vm0, %v1396_v43  ;;  %v1166_v51 = vadd.f32 %v1619_v47, %v1165_v50 }
0x1e2d   :  { %v1170_v55 = vsel %vm1169_vm1, %v1619_v47, %v1166_v51 }
0x1e2e   :  { %v1175_v58 = vsel %vm1172_vm2, %v1174_v56, %v1170_v55 }
0x1e2f   :  { %v1178_v60 = vmul.f32 %v1175_v58, %v2081_v20 }
0x1e8c   :  { %v1181_v57 = vpop.permute.xlu1 %1180 }
0x1e8d   :  { %v1183_v59 = vmul.f32 %v1181_v57, %v1175_v58 }
0x1e8f   :  { %1185 = vrot.lane.b32.xlu2 %v1183_v59, %s1799_s4 }
0x1ee9   :  { %v1186_v61 = vpop.permute.xlu2 %1185 }
0x1eea   :  { %v1188_v62 = vadd.f32 %v1186_v61, %v1178_v60 }
0x1eec   :  { %1620 = vtanh.f32 %v1188_v62 }
0x1ef2   :  { %v1621_v8 = vpop.eup %1620 }
0x1ef3   :  { %1191 = vrot.lane.b32.xlu0 %v1621_v8, %s1798_s13 }
0x1f65   :  { %v1192_v63 = vpop.permute.xlu0 %1191 }
0x1f66   :  { %v1194_v0 = vmul.f32 %v1192_v63, %v1175_v58 }
0x1f68   :  { %1196 = vrot.lane.b32.xlu1 %v1194_v0, %s1799_s4 }
0x1fda   :  { %v1197_v1 = vpop.permute.xlu1 %1196 }
0x1fdb   :  { %1200 = vst.msk [vmem:[#allocation3 + $0x28] sm:$0xff] %vm222_vm7, %v1197_v1  ;;  %1471 = vmatmul.msk.f32.vlgmr.msra.gmra.mxu3 %vm222_vm7, %v1197_v1 }
0x1fe2   :  { %v1336_v2 = vld [vmem:[#allocation3 + $0x28] sm:$0xff] }
0x1fe3   :  { %1480 = vmatmul.msk.f32.vlgmr.msrb.gmra.mxu3 %vm222_vm7, %v1336_v2 }
0x205e   :  { %v1220_v34 = vpop.f32.mrf.mxu3 }
0x205f   :  { %v1221_v29 = vadd.f32 %v2054_v53, %v1220_v34 }
0x2061   :  { %1622 = vtanh.f32 %v1221_v29  ;;  %v1472_v6 = vmul.f32 -1.442695, %v1221_v29 }
0x2063   :  { %1624 = vpow2.f32 %v1472_v6 }
0x2066   :  { %v1398_v3 = vpop.f32.mrf.mxu3 }
0x2067   :  { %v1623_v4 = vpop.eup %1622  ;;  %v1399_v5 = vadd.f32 %v2107_v36, %v1398_v3 }
0x2068   :  { %1245 = vrot.lane.b32.xlu2 %v1623_v4, %s1798_s13 }
0x2069   :  { %1412 = vst.msk [vmem:[#allocation13 + $0x28] sm:$0xff] %vm147_vm0, %v1399_v5  ;;  %v1625_v7 = vpop.eup %1624 }
0x206a   :  { %v1226_v9 = vadd.f32 1.0, %v1625_v7 }
0x206c   :  { %1626 = vrcp.f32 %v1226_v9  ;;  %v1238_v15 = vand.u32 2147483648, %v1226_v9  ;;  %vm1232_vm4 = vweird.f32 %v1226_v9  ;;  %v1236_v16 = vand.u32 2147483647, %v1226_v9 }
0x206e   :  { %v1239_v18 = vor.u32 1.1754944e-38, %v1238_v15  ;;  %vm1237_vm6 = vcmp.eq.f32.partialorder %v1236_v16, 8.507059e+37 }
0x2072   :  { %v1627_v10 = vpop.eup %1626 }
0x2073   :  { %v1228_v11 = vmul.f32 %v1627_v10, %v1226_v9  ;;  %vm1233_vm3 = vweird.f32 %v1627_v10 }
0x2074   :  { %vm1234_vm5 = vmor %vm1232_vm4, %vm1233_vm3 }
0x2075   :  { %v1229_v12 = vsub.f32 1.0, %v1228_v11 }
0x2077   :  { %v1230_v13 = vmul.f32 %v1627_v10, %v1229_v12 }
0x2079   :  { %v1231_v14 = vadd.f32 %v1627_v10, %v1230_v13 }
0x207b   :  { %v1235_v17 = vsel %vm1234_vm5, %v1627_v10, %v1231_v14 }
0x207c   :  { %v1240_v20 = vsel %vm1237_vm6, %v1239_v18, %v1235_v17 }
0x207d   :  { %v1243_v22 = vmul.f32 %v1240_v20, %v1188_v62 }
0x20c2   :  { %v1246_v19 = vpop.permute.xlu2 %1245 }
0x20c3   :  { %v1248_v21 = vmul.f32 %v1246_v19, %v1240_v20 }
0x20c5   :  { %1250 = vrot.lane.b32.xlu0 %v1248_v21, %s1799_s4 }
0x2137   :  { %v1251_v23 = vpop.permute.xlu0 %1250 }
0x2138   :  { %v1253_v24 = vadd.f32 %v1251_v23, %v1243_v22 }
0x213a   :  { %1628 = vtanh.f32 %v1253_v24 }
0x2140   :  { %v1629_v25 = vpop.eup %1628 }
0x2141   :  { %1256 = vrot.lane.b32.xlu1 %v1629_v25, %s1798_s13 }
0x21b3   :  { %v1257_v26 = vpop.permute.xlu1 %1256 }
0x21b4   :  { %v1259_v27 = vmul.f32 %v1257_v26, %v1240_v20 }
0x21b6   :  { %1261 = vrot.lane.b32.xlu2 %v1259_v27, %s1799_s4 }
0x2210   :  { %v1262_v28 = vpop.permute.xlu2 %1261 }
0x2211   :  { %1265 = vst.msk [vmem:[#allocation3 + $0x30] sm:$0xff] %vm222_vm7, %v1262_v28  ;;  %1473 = vmatmul.msk.f32.vlgmr.msrb.gmra.mxu1 %vm222_vm7, %v1262_v28 }
0x2218   :  { %v1337_v31 = vld [vmem:[#allocation3 + $0x30] sm:$0xff] }
0x2219   :  { %1475 = vmatmul.msk.f32.vlgmr.msra.gmra.mxu1 %vm222_vm7, %v1331_v30  ;;  %1481 = vmatmul.msk.f32.gmra.mxu3 %vm222_vm7, %v1337_v31 }
0x2221   :  { %1476 = vmatmul.msk.f32.gmra.mxu1 %vm222_vm7, %v1332_v32 }
0x228e   :  { %v1285_v33 = vpop.f32.mrf.mxu1 }
0x228f   :  { %v1286_v35 = vadd.f32 %v2054_v53, %v1285_v33 }
0x2291   :  { %1630 = vtanh.f32 %v1286_v35  ;;  %v1474_v53 = vmul.f32 -1.442695, %v1286_v35 }
0x2293   :  { %1632 = vpow2.f32 %v1474_v53 }
0x2296   :  { %v1383_v37 = vpop.f32.mrf.mxu1 }
0x2297   :  { %v1631_v38 = vpop.eup %1630  ;;  %v1384_v39 = vadd.f32 %v2107_v36, %v1383_v37 }
0x2298   :  { %1310 = vrot.lane.b32.xlu0 %v1631_v38, %s1798_s13 }
0x2299   :  { %1407 = vst.msk [vmem:[#allocation13] sm:$0xff] %vm147_vm0, %v1384_v39  ;;  %v1633_v44 = vpop.eup %1632 }
0x229a   :  { %v1291_v45 = vadd.f32 1.0, %v1633_v44 }
0x229c   :  { %v1401_v40 = vpop.f32.mrf.mxu3  ;;  %1634 = vrcp.f32 %v1291_v45  ;;  %v1303_v51 = vand.u32 2147483648, %v1291_v45  ;;  %vm1297_vm9 = vweird.f32 %v1291_v45  ;;  %v1301_v52 = vand.u32 2147483647, %v1291_v45 }
0x229d   :  { %v1402_v41 = vadd.f32 %v2107_v36, %v1401_v40 }
0x229e   :  { %v1386_v42 = vpop.f32.mrf.mxu1  ;;  %v1304_v55 = vor.u32 1.1754944e-38, %v1303_v51  ;;  %vm1302_vm11 = vcmp.eq.f32.partialorder %v1301_v52, 8.507059e+37 }
0x229f   :  { %1413 = vst.msk [vmem:[#allocation13 + $0x30] sm:$0xff] %vm147_vm0, %v1402_v41  ;;  %v1387_v43 = vadd.f32 %v2107_v36, %v1386_v42 }
0x22a1   :  { %1408 = vst.msk [vmem:[#allocation13 + $0x8] sm:$0xff] %vm147_vm0, %v1387_v43 }
0x22a2   :  { %v1635_v46 = vpop.eup %1634 }
0x22a3   :  { %v1293_v47 = vmul.f32 %v1635_v46, %v1291_v45  ;;  %vm1298_vm8 = vweird.f32 %v1635_v46 }
0x22a4   :  { %vm1299_vm10 = vmor %vm1297_vm9, %vm1298_vm8 }
0x22a5   :  { %v1294_v48 = vsub.f32 1.0, %v1293_v47 }
0x22a7   :  { %v1295_v49 = vmul.f32 %v1635_v46, %v1294_v48 }
0x22a9   :  { %v1296_v50 = vadd.f32 %v1635_v46, %v1295_v49 }
0x22ab   :  { %v1300_v54 = vsel %vm1299_vm10, %v1635_v46, %v1296_v50 }
0x22ac   :  { %v1305_v57 = vsel %vm1302_vm11, %v1304_v55, %v1300_v54 }
0x22ad   :  { %v1308_v59 = vmul.f32 %v1305_v57, %v1253_v24 }
0x230a   :  { %v1311_v56 = vpop.permute.xlu0 %1310 }
0x230b   :  { %v1313_v58 = vmul.f32 %v1311_v56, %v1305_v57 }
0x230d   :  { %1315 = vrot.lane.b32.xlu1 %v1313_v58, %s1799_s4 }
0x237f   :  { %v1316_v60 = vpop.permute.xlu1 %1315 }
0x2380   :  { %v1318_v61 = vadd.f32 %v1316_v60, %v1308_v59 }
0x2382   :  { %1636 = vtanh.f32 %v1318_v61 }
0x2388   :  { %v1637_v62 = vpop.eup %1636 }
0x2389   :  { %1321 = vrot.lane.b32.xlu2 %v1637_v62, %s1798_s13 }
0x23e3   :  { %v1322_v8 = vpop.permute.xlu2 %1321 }
0x23e4   :  { %v1324_v63 = vmul.f32 %v1322_v8, %v1305_v57 }
0x23e6   :  { %1326 = vrot.lane.b32.xlu0 %v1324_v63, %s1799_s4 }
0x2458   :  { %v1327_v0 = vpop.permute.xlu0 %1326 }
0x2459   :  { %1330 = vst.msk [vmem:[#allocation3 + $0x38] sm:$0xff] %vm222_vm7, %v1327_v0 }
0x2460   :  { %v1338_v1 = vld [vmem:[#allocation3 + $0x38] sm:$0xff] }
0x2461   :  { %1482 = vmatmul.msk.f32.gmra.mxu3 %vm222_vm7, %v1338_v1 }
0x24e4   :  { %v1404_v2 = vpop.f32.mrf.mxu3 }
0x24e5   :  { %v1405_v34 = vadd.f32 %v2107_v36, %v1404_v2 }
0x24e7   :  { %1414 = vst.msk [vmem:[#allocation13 + $0x38] sm:$0xff] %vm147_vm0, %v1405_v34 }
0x24e8   :  { %1427 = dma.vmem_to_hbm [thread:$0]  %s1420_s22, 1024, %s1422_s24, [#allocation6], %s1791_s25, %s1791_s25, %s1792_s26  }
0x24e9   :  { %1788 = dma.done.wait [#allocation6], 1024  }
0x24ea   :  { %1789 = vsyncadd [#allocation6], 4294966272 }
0x24eb   :  { %1432 = vsyncpa [#allocation5], 1 }
0x24ec   :  { %1433 = vsyncpa [#allocation8], 1 }
0x24ed   :  { %1434 = vsyncpa [#allocation11], 1 }
0x24ee   :  { %1435 = vsyncpa [#allocation6], 1 }

</bundles_post_ra>
